<compile_context>
chip_gen: v6e
topology: v6e:2x2x1
jax: 0.10.0
libtpu: 0.0.40
codegen_flags: <defaults>
</compile_context>

<pallas_src>
import functools

import jax
import jax.numpy as jnp
from jax.experimental import pallas as pl
from jax.experimental.pallas import tpu as pltpu


def _flow_step_kernel(d1, d2,
                      scalars_ref,                        # SMEM (2,): [exp(scale), ld_const]
                      x_ref, cond_ref,                    # (TB, D), (TB, C)
                      Wp1_ref, bp1_ref, Wp2_ref, bp2_ref, # fused ActNorm+1x1, split by output cols
                      w1a_ref, w1b_ref, b1_ref,           # coupling layer 1 (split: x1 part / cond part)
                      w2_ref, b2_ref,                     # coupling layer 2
                      w3s_ref, b3s_ref, w3t_ref, b3t_ref, # coupling layer 3, split into s / t halves
                      y_ref, ld_ref):
    x = x_ref[...]
    cond = cond_ref[...]

    # Fused ActNorm + invertible 1x1, output columns pre-split so no in-kernel slicing:
    #   x1 = x @ W'[:, :d1] + b'[:d1]   ,   x2 = x @ W'[:, d1:] + b'[d1:]
    x1 = jnp.dot(x, Wp1_ref[...], preferred_element_type=jnp.float32) + bp1_ref[...]
    x2 = jnp.dot(x, Wp2_ref[...], preferred_element_type=jnp.float32) + bp2_ref[...]

    # Coupling MLP.  cat([x1, cond], -1) @ w1 == x1 @ w1[:d1] + cond @ w1[d1:]  (no concat).
    h = (jnp.dot(x1, w1a_ref[...], preferred_element_type=jnp.float32)
         + jnp.dot(cond, w1b_ref[...], preferred_element_type=jnp.float32)
         + b1_ref[...])
    h = jnp.maximum(h, 0.0)
    h = jnp.maximum(
        jnp.dot(h, w2_ref[...], preferred_element_type=jnp.float32) + b2_ref[...], 0.0)

    # Third layer split into the s-half and t-half (no st[:, :d2] / st[:, d2:] slicing).
    s = jnp.tanh(
        jnp.dot(h, w3s_ref[...], preferred_element_type=jnp.float32) + b3s_ref[...]
    ) * scalars_ref[0]                                  # exp(coupling.scale), SMEM scalar
    t = jnp.dot(h, w3t_ref[...], preferred_element_type=jnp.float32) + b3t_ref[...]

    y2 = x2 * jnp.exp(s) + t

    # Sliced stores directly into the output block (no full-width concat temporary).
    y_ref[:, :d1] = x1
    y_ref[:, d1:] = y2
    # ld = sum(log_scale) + slogdet(W) + s.sum(-1)   (constant part precomputed on host)
    ld_ref[...] = jnp.sum(s, axis=-1, keepdims=True) + scalars_ref[1]


def flow_step_forward(params, x, cond, *, tile_b=512):
    """Pallas implementation of _FlowStep.forward (ActNorm assumed already initialised)."""
    f32 = jnp.float32
    x = x.astype(f32)
    cond = cond.astype(f32)

    B, D = x.shape
    C = cond.shape[-1]
    H = params["w1"].shape[-1]
    d1 = D // 2
    d2 = D - d1

    bias = params["bias"].astype(f32)
    log_scale = params["log_scale"].astype(f32)
    W = params["W"].astype(f32)

    # --- Host-side parameter-only folds (done once per call, not once per tile) ---
    # ActNorm folded into the 1x1:  ((x + b) * e^ls) @ W == x @ (e^ls[:,None]*W) + (b*e^ls) @ W
    scale_vec = jnp.exp(log_scale)
    Wp = scale_vec[:, None] * W
    bp = (bias * scale_vec) @ W
    # TODO(synk): slogdet(W) has no in-kernel equivalent; parameter-only, computed in plain JAX.
    ld_const = jnp.sum(log_scale) + jnp.linalg.slogdet(W)[1]
    exp_scale = jnp.exp(params["scale"].astype(f32)).reshape(())
    scalars = jnp.stack([exp_scale, ld_const.astype(f32)])          # (2,) -> SMEM

    # Split weights host-side so the kernel needs no concats / narrow result slices.
    Wp1, Wp2 = Wp[:, :d1], Wp[:, d1:]
    bp1, bp2 = bp[:d1].reshape(1, d1), bp[d1:].reshape(1, d2)
    w1 = params["w1"].astype(f32)
    w1a, w1b = w1[:d1], w1[d1:]
    b1 = params["b1"].astype(f32).reshape(1, H)
    w2 = params["w2"].astype(f32)
    b2 = params["b2"].astype(f32).reshape(1, H)
    w3 = params["w3"].astype(f32)
    b3 = params["b3"].astype(f32)
    w3s, w3t = w3[:, :d2], w3[:, d2:]
    b3s, b3t = b3[:d2].reshape(1, d2), b3[d2:].reshape(1, d2)

    # --- Batch tiling ---
    if B <= tile_b:
        tb = B                       # single tile; block == full array dims
        B_pad = B
        x_p, cond_p = x, cond
    else:
        tb = tile_b                  # multiple of 8 (sublane rule)
        B_pad = ((B + tb - 1) // tb) * tb
        pad = B_pad - B
        x_p = jnp.pad(x, ((0, pad), (0, 0))) if pad else x
        cond_p = jnp.pad(cond, ((0, pad), (0, 0))) if pad else cond
    n_tiles = B_pad // tb

    smem = pl.BlockSpec(memory_space=pltpu.MemorySpace.SMEM)

    def resident(a):                 # weight stays at block (0, 0) => VMEM-resident across the grid
        return pl.BlockSpec(a.shape, lambda i: (0,) * a.ndim)

    in_specs = [
        smem,                                              # scalars
        pl.BlockSpec((tb, D), lambda i: (i, 0)),           # x tile
        pl.BlockSpec((tb, C), lambda i: (i, 0)),           # cond tile
        resident(Wp1), resident(bp1), resident(Wp2), resident(bp2),
        resident(w1a), resident(w1b), resident(b1),
        resident(w2), resident(b2),
        resident(w3s), resident(b3s), resident(w3t), resident(b3t),
    ]
    out_specs = (pl.BlockSpec((tb, D), lambda i: (i, 0)),
                 pl.BlockSpec((tb, 1), lambda i: (i, 0)))

    # Advisory cost estimate (per padded row).
    flops_per_row = 2 * (D * d1 + D * d2 + d1 * H + C * H + H * H + 2 * H * d2) + 8 * D
    weight_elems = (D * d1 + d1 + D * d2 + d2 + d1 * H + C * H + H
                    + H * H + H + 2 * (H * d2 + d2))
    cost = pl.CostEstimate(
        flops=int(flops_per_row * B_pad),
        transcendentals=int(2 * d2 * B_pad),
        bytes_accessed=int(4 * (B_pad * (D + C + D + 1) + weight_elems)))

    # Explicit VMEM limit: well above what these tiles need, above v5e's 16 MiB default,
    # and below v7x's 64 MiB physical VMEM.  TODO(synk): re-derive tile_b against the
    # 64 MiB v7x ceiling if feature dims are padded to lane width for real workloads.
    compiler_params = pltpu.CompilerParams(
        dimension_semantics=("parallel",),
        vmem_limit_bytes=32 * 1024 * 1024)

    kernel = functools.partial(_flow_step_kernel, d1, d2)

    y_pad, ld_pad = pl.pallas_call(
        kernel,
        grid=(n_tiles,),
        in_specs=in_specs,
        out_specs=out_specs,
        out_shape=(jax.ShapeDtypeStruct((B_pad, D), f32),
                   jax.ShapeDtypeStruct((B_pad, 1), f32)),
        compiler_params=compiler_params,
        cost_estimate=cost,
    )(scalars, x_p, cond_p,
      Wp1, bp1, Wp2, bp2,
      w1a, w1b, b1,
      w2, b2,
      w3s, b3s, w3t, b3t)

    return y_pad[:B], ld_pad[:B, 0]


def actnorm_first_call_init(x):
    """Reproduce _ActNorm's data-dependent first-forward init (torch.std is unbiased)."""
    bias = -jnp.mean(x, axis=0)
    std = jnp.std(x, axis=0, ddof=1)
    log_scale = jnp.log(1.0 / (std + 1e-6))
    return bias, log_scale


def ref_forward(params, x, cond):
    """Pure-JAX reference mirroring the PyTorch module."""
    D = x.shape[-1]
    d1 = D // 2
    d2 = D - d1
    y = (x + params["bias"]) * jnp.exp(params["log_scale"])
    ld1 = jnp.sum(params["log_scale"])
    y = y @ params["W"]
    ld2 = jnp.linalg.slogdet(params["W"])[1]
    x1, x2 = y[:, :d1], y[:, d1:]
    h = jnp.concatenate([x1, cond], -1)
    h = jax.nn.relu(h @ params["w1"] + params["b1"])
    h = jax.nn.relu(h @ params["w2"] + params["b2"])
    st = h @ params["w3"] + params["b3"]
    s = jnp.tanh(st[:, :d2]) * jnp.exp(params["scale"][0])
    t = st[:, d2:]
    y2 = x2 * jnp.exp(s) + t
    return jnp.concatenate([x1, y2], -1), ld1 + ld2 + jnp.sum(s, -1)


if __name__ == "__main__":
    DIM, COND_DIM, HIDDEN = 8, 4, 32
    d1 = DIM // 2
    d2 = DIM - d1

    key = jax.random.PRNGKey(0)
    kx, kc, kW, k1, k2, k3 = jax.random.split(key, 6)

    # Modest batch so the batch grid actually runs multiple tiles (tile_b=128 -> 2 steps).
    B = 256
    x = jax.random.normal(kx, (B, DIM), dtype=jnp.float32)
    cond = jax.random.normal(kc, (B, COND_DIM), dtype=jnp.float32)

    # Deterministic parameter init (shapes from the module's __init__).
    W = jnp.linalg.qr(jax.random.normal(kW, (DIM, DIM), dtype=jnp.float32))[0]
    w1 = 0.1 * jax.random.normal(k1, (d1 + COND_DIM, HIDDEN), dtype=jnp.float32)
    b1 = jnp.zeros((HIDDEN,), jnp.float32)
    w2 = 0.1 * jax.random.normal(k2, (HIDDEN, HIDDEN), dtype=jnp.float32)
    b2 = jnp.zeros((HIDDEN,), jnp.float32)
    w3 = 0.1 * jax.random.normal(k3, (HIDDEN, 2 * d2), dtype=jnp.float32)
    b3 = jnp.zeros((2 * d2,), jnp.float32)
    scale = jnp.zeros((1,), jnp.float32)  # coupling.scale = zeros(1)

    # ActNorm first-forward data-dependent init (matches initialised=False path).
    bias, log_scale = actnorm_first_call_init(x)

    params = dict(bias=bias, log_scale=log_scale, W=W,
                  w1=w1, b1=b1, w2=w2, b2=b2, w3=w3, b3=b3, scale=scale)

    # Multi-tile batch grid path.
    y, ld = flow_step_forward(params, x, cond, tile_b=128)
    y = jax.block_until_ready(y)
    ld = jax.block_until_ready(ld)

    y_ref, ld_ref = ref_forward(params, x, cond)
    assert y.shape == (B, DIM) and ld.shape == (B,)
    assert jnp.allclose(y, y_ref, atol=1e-4, rtol=1e-4)
    assert jnp.allclose(ld, ld_ref, atol=1e-4, rtol=1e-4)

    # Tiny, non-multiple-of-8 batch (single full-array tile path).
    Bs = 6
    ys, lds = flow_step_forward(params, x[:Bs], cond[:Bs], tile_b=128)
    ys = jax.block_until_ready(ys)
    lds = jax.block_until_ready(lds)
    ys_ref, lds_ref = ref_forward(params, x[:Bs], cond[:Bs])
    assert jnp.allclose(ys, ys_ref, atol=1e-4, rtol=1e-4)
    assert jnp.allclose(lds, lds_ref, atol=1e-4, rtol=1e-4)

    print("KERNEL_OK")
</pallas_src>

<mosaic_0001>
module attributes {stable_mosaic.version = 11 : i64} {
  func.func @_flow_step_kernel(%arg0: i32, %arg1: memref<2xf32, #tpu.memory_space<smem>>, %arg2: memref<128x8xf32, #tpu.memory_space<vmem>>, %arg3: memref<128x4xf32, #tpu.memory_space<vmem>>, %arg4: memref<8x4xf32, #tpu.memory_space<vmem>>, %arg5: memref<1x4xf32, #tpu.memory_space<vmem>>, %arg6: memref<8x4xf32, #tpu.memory_space<vmem>>, %arg7: memref<1x4xf32, #tpu.memory_space<vmem>>, %arg8: memref<4x32xf32, #tpu.memory_space<vmem>>, %arg9: memref<4x32xf32, #tpu.memory_space<vmem>>, %arg10: memref<1x32xf32, #tpu.memory_space<vmem>>, %arg11: memref<32x32xf32, #tpu.memory_space<vmem>>, %arg12: memref<1x32xf32, #tpu.memory_space<vmem>>, %arg13: memref<32x4xf32, #tpu.memory_space<vmem>>, %arg14: memref<1x4xf32, #tpu.memory_space<vmem>>, %arg15: memref<32x4xf32, #tpu.memory_space<vmem>>, %arg16: memref<1x4xf32, #tpu.memory_space<vmem>>, %arg17: memref<128x8xf32, #tpu.memory_space<vmem>>, %arg18: memref<128x1xf32, #tpu.memory_space<vmem>>) attributes {dimension_semantics = [#tpu.dimension_semantics<parallel>], iteration_bounds = array<i64: 2>, scalar_prefetch = 0 : i64, scratch_operands = 0 : i64, tpu.core_type = #tpu.core_type<tc>, window_params = [{transform_indices = @transform_0, window_bounds = array<i64: 2>}, {transform_indices = @transform_1, window_bounds = array<i64: 128, 8>}, {transform_indices = @transform_2, window_bounds = array<i64: 128, 4>}, {pipeline_mode = #tpu.pipeline_mode<synchronous>, transform_indices = @transform_3, window_bounds = array<i64: 8, 4>}, {pipeline_mode = #tpu.pipeline_mode<synchronous>, transform_indices = @transform_4, window_bounds = array<i64: 1, 4>}, {pipeline_mode = #tpu.pipeline_mode<synchronous>, transform_indices = @transform_5, window_bounds = array<i64: 8, 4>}, {pipeline_mode = #tpu.pipeline_mode<synchronous>, transform_indices = @transform_6, window_bounds = array<i64: 1, 4>}, {pipeline_mode = #tpu.pipeline_mode<synchronous>, transform_indices = @transform_7, window_bounds = array<i64: 4, 32>}, {pipeline_mode = #tpu.pipeline_mode<synchronous>, transform_indices = @transform_8, window_bounds = array<i64: 4, 32>}, {pipeline_mode = #tpu.pipeline_mode<synchronous>, transform_indices = @transform_9, window_bounds = array<i64: 1, 32>}, {pipeline_mode = #tpu.pipeline_mode<synchronous>, transform_indices = @transform_10, window_bounds = array<i64: 32, 32>}, {pipeline_mode = #tpu.pipeline_mode<synchronous>, transform_indices = @transform_11, window_bounds = array<i64: 1, 32>}, {pipeline_mode = #tpu.pipeline_mode<synchronous>, transform_indices = @transform_12, window_bounds = array<i64: 32, 4>}, {pipeline_mode = #tpu.pipeline_mode<synchronous>, transform_indices = @transform_13, window_bounds = array<i64: 1, 4>}, {pipeline_mode = #tpu.pipeline_mode<synchronous>, transform_indices = @transform_14, window_bounds = array<i64: 32, 4>}, {pipeline_mode = #tpu.pipeline_mode<synchronous>, transform_indices = @transform_15, window_bounds = array<i64: 1, 4>}, {transform_indices = @transform_16, window_bounds = array<i64: 128, 8>}, {transform_indices = @transform_17, window_bounds = array<i64: 128, 1>}]} {
    %c0 = arith.constant 0 : index
    %c0_0 = arith.constant 0 : index
    %0 = vector.load %arg2[%c0, %c0_0] : memref<128x8xf32, #tpu.memory_space<vmem>>, vector<128x8xf32>
    %c0_1 = arith.constant 0 : index
    %c0_2 = arith.constant 0 : index
    %1 = vector.load %arg3[%c0_1, %c0_2] : memref<128x4xf32, #tpu.memory_space<vmem>>, vector<128x4xf32>
    %c0_3 = arith.constant 0 : index
    %c0_4 = arith.constant 0 : index
    %2 = vector.load %arg4[%c0_3, %c0_4] : memref<8x4xf32, #tpu.memory_space<vmem>>, vector<8x4xf32>
    %cst = arith.constant dense<0.000000e+00> : vector<128x4xf32>
    %3 = tpu.matmul %0, %2, %cst {dimension_numbers = #tpu.dot_dimension_numbers<[1], [0], [0], [1], [0, 0, 1, 1], [], []>} : vector<128x8xf32>, vector<8x4xf32>, vector<128x4xf32> -> vector<128x4xf32>
    %c0_5 = arith.constant 0 : index
    %c0_6 = arith.constant 0 : index
    %4 = vector.load %arg5[%c0_5, %c0_6] : memref<1x4xf32, #tpu.memory_space<vmem>>, vector<1x4xf32>
    %5 = vector.broadcast %4 : vector<1x4xf32> to vector<128x4xf32>
    %6 = arith.addf %3, %5 : vector<128x4xf32>
    %c0_7 = arith.constant 0 : index
    %c0_8 = arith.constant 0 : index
    %7 = vector.load %arg6[%c0_7, %c0_8] : memref<8x4xf32, #tpu.memory_space<vmem>>, vector<8x4xf32>
    %cst_9 = arith.constant dense<0.000000e+00> : vector<128x4xf32>
    %8 = tpu.matmul %0, %7, %cst_9 {dimension_numbers = #tpu.dot_dimension_numbers<[1], [0], [0], [1], [0, 0, 1, 1], [], []>} : vector<128x8xf32>, vector<8x4xf32>, vector<128x4xf32> -> vector<128x4xf32>
    %c0_10 = arith.constant 0 : index
    %c0_11 = arith.constant 0 : index
    %9 = vector.load %arg7[%c0_10, %c0_11] : memref<1x4xf32, #tpu.memory_space<vmem>>, vector<1x4xf32>
    %10 = vector.broadcast %9 : vector<1x4xf32> to vector<128x4xf32>
    %11 = arith.addf %8, %10 : vector<128x4xf32>
    %c0_12 = arith.constant 0 : index
    %c0_13 = arith.constant 0 : index
    %12 = vector.load %arg8[%c0_12, %c0_13] : memref<4x32xf32, #tpu.memory_space<vmem>>, vector<4x32xf32>
    %cst_14 = arith.constant dense<0.000000e+00> : vector<128x32xf32>
    %13 = tpu.matmul %6, %12, %cst_14 {dimension_numbers = #tpu.dot_dimension_numbers<[1], [0], [0], [1], [0, 0, 1, 1], [], []>} : vector<128x4xf32>, vector<4x32xf32>, vector<128x32xf32> -> vector<128x32xf32>
    %c0_15 = arith.constant 0 : index
    %c0_16 = arith.constant 0 : index
    %14 = vector.load %arg9[%c0_15, %c0_16] : memref<4x32xf32, #tpu.memory_space<vmem>>, vector<4x32xf32>
    %cst_17 = arith.constant dense<0.000000e+00> : vector<128x32xf32>
    %15 = tpu.matmul %1, %14, %cst_17 {dimension_numbers = #tpu.dot_dimension_numbers<[1], [0], [0], [1], [0, 0, 1, 1], [], []>} : vector<128x4xf32>, vector<4x32xf32>, vector<128x32xf32> -> vector<128x32xf32>
    %16 = arith.addf %13, %15 : vector<128x32xf32>
    %c0_18 = arith.constant 0 : index
    %c0_19 = arith.constant 0 : index
    %17 = vector.load %arg10[%c0_18, %c0_19] : memref<1x32xf32, #tpu.memory_space<vmem>>, vector<1x32xf32>
    %18 = vector.broadcast %17 : vector<1x32xf32> to vector<128x32xf32>
    %19 = arith.addf %16, %18 : vector<128x32xf32>
    %cst_20 = arith.constant 0.000000e+00 : f32
    %20 = vector.broadcast %cst_20 : f32 to vector<128x32xf32>
    %21 = arith.maximumf %19, %20 : vector<128x32xf32>
    %c0_21 = arith.constant 0 : index
    %c0_22 = arith.constant 0 : index
    %22 = vector.load %arg11[%c0_21, %c0_22] : memref<32x32xf32, #tpu.memory_space<vmem>>, vector<32x32xf32>
    %cst_23 = arith.constant dense<0.000000e+00> : vector<128x32xf32>
    %23 = tpu.matmul %21, %22, %cst_23 {dimension_numbers = #tpu.dot_dimension_numbers<[1], [0], [0], [1], [0, 0, 1, 1], [], []>} : vector<128x32xf32>, vector<32x32xf32>, vector<128x32xf32> -> vector<128x32xf32>
    %c0_24 = arith.constant 0 : index
    %c0_25 = arith.constant 0 : index
    %24 = vector.load %arg12[%c0_24, %c0_25] : memref<1x32xf32, #tpu.memory_space<vmem>>, vector<1x32xf32>
    %25 = vector.broadcast %24 : vector<1x32xf32> to vector<128x32xf32>
    %26 = arith.addf %23, %25 : vector<128x32xf32>
    %cst_26 = arith.constant 0.000000e+00 : f32
    %27 = vector.broadcast %cst_26 : f32 to vector<128x32xf32>
    %28 = arith.maximumf %26, %27 : vector<128x32xf32>
    %c0_27 = arith.constant 0 : index
    %c0_28 = arith.constant 0 : index
    %29 = vector.load %arg13[%c0_27, %c0_28] : memref<32x4xf32, #tpu.memory_space<vmem>>, vector<32x4xf32>
    %cst_29 = arith.constant dense<0.000000e+00> : vector<128x4xf32>
    %30 = tpu.matmul %28, %29, %cst_29 {dimension_numbers = #tpu.dot_dimension_numbers<[1], [0], [0], [1], [0, 0, 1, 1], [], []>} : vector<128x32xf32>, vector<32x4xf32>, vector<128x4xf32> -> vector<128x4xf32>
    %c0_30 = arith.constant 0 : index
    %c0_31 = arith.constant 0 : index
    %31 = vector.load %arg14[%c0_30, %c0_31] : memref<1x4xf32, #tpu.memory_space<vmem>>, vector<1x4xf32>
    %32 = vector.broadcast %31 : vector<1x4xf32> to vector<128x4xf32>
    %33 = arith.addf %30, %32 : vector<128x4xf32>
    %34 = math.tanh %33 : vector<128x4xf32>
    %c0_32 = arith.constant 0 : index
    %35 = memref.load %arg1[%c0_32] : memref<2xf32, #tpu.memory_space<smem>>
    %36 = vector.broadcast %35 : f32 to vector<128x4xf32>
    %37 = arith.mulf %34, %36 : vector<128x4xf32>
    %c0_33 = arith.constant 0 : index
    %c0_34 = arith.constant 0 : index
    %38 = vector.load %arg15[%c0_33, %c0_34] : memref<32x4xf32, #tpu.memory_space<vmem>>, vector<32x4xf32>
    %cst_35 = arith.constant dense<0.000000e+00> : vector<128x4xf32>
    %39 = tpu.matmul %28, %38, %cst_35 {dimension_numbers = #tpu.dot_dimension_numbers<[1], [0], [0], [1], [0, 0, 1, 1], [], []>} : vector<128x32xf32>, vector<32x4xf32>, vector<128x4xf32> -> vector<128x4xf32>
    %c0_36 = arith.constant 0 : index
    %c0_37 = arith.constant 0 : index
    %40 = vector.load %arg16[%c0_36, %c0_37] : memref<1x4xf32, #tpu.memory_space<vmem>>, vector<1x4xf32>
    %41 = vector.broadcast %40 : vector<1x4xf32> to vector<128x4xf32>
    %42 = arith.addf %39, %41 : vector<128x4xf32>
    %43 = math.exp %37 : vector<128x4xf32>
    %44 = arith.mulf %11, %43 : vector<128x4xf32>
    %45 = arith.addf %44, %42 : vector<128x4xf32>
    %c0_38 = arith.constant 0 : index
    %c0_39 = arith.constant 0 : index
    %46 = vector.load %arg17[%c0_38, %c0_39] : memref<128x8xf32, #tpu.memory_space<vmem>>, vector<128x4xf32>
    tpu.vector_store %arg17[%c0_38, %c0_39], %6 {strides = array<i32>} : memref<128x8xf32, #tpu.memory_space<vmem>>, vector<128x4xf32>,
    %c0_40 = arith.constant 0 : index
    %c4 = arith.constant 4 : index
    %47 = vector.load %arg17[%c0_40, %c4] : memref<128x8xf32, #tpu.memory_space<vmem>>, vector<128x4xf32>
    tpu.vector_store %arg17[%c0_40, %c4], %45 {strides = array<i32>} : memref<128x8xf32, #tpu.memory_space<vmem>>, vector<128x4xf32>,
    %cst_41 = arith.constant dense<0.000000e+00> : vector<128xf32>
    %48 = vector.multi_reduction <add>, %37, %cst_41 [1] : vector<128x4xf32> to vector<128xf32>
    %49 = vector.shape_cast %48 : vector<128xf32> to vector<128x1xf32>
    %c1 = arith.constant 1 : index
    %50 = memref.load %arg1[%c1] : memref<2xf32, #tpu.memory_space<smem>>
    %51 = vector.broadcast %50 : f32 to vector<128x1xf32>
    %52 = arith.addf %49, %51 : vector<128x1xf32>
    %c0_42 = arith.constant 0 : index
    %c0_43 = arith.constant 0 : index
    %53 = vector.load %arg18[%c0_42, %c0_43] : memref<128x1xf32, #tpu.memory_space<vmem>>, vector<128x1xf32>
    tpu.vector_store %arg18[%c0_42, %c0_43], %52 {strides = array<i32>} : memref<128x1xf32, #tpu.memory_space<vmem>>, vector<128x1xf32>,
    return
  }
  func.func @transform_0(%arg0: i32) -> i32 {
    %c0_i32 = arith.constant 0 : i32
    %c0_i32_0 = arith.constant 0 : i32
    return %c0_i32 : i32
  }
  func.func @transform_1(%arg0: i32) -> (i32, i32) {
    %c0_i32 = arith.constant 0 : i32
    %c0_i32_0 = arith.constant 0 : i32
    return %arg0, %c0_i32 : i32, i32
  }
  func.func @transform_2(%arg0: i32) -> (i32, i32) {
    %c0_i32 = arith.constant 0 : i32
    %c0_i32_0 = arith.constant 0 : i32
    return %arg0, %c0_i32 : i32, i32
  }
  func.func @transform_3(%arg0: i32) -> (i32, i32) {
    %c0_i32 = arith.constant 0 : i32
    %c0_i32_0 = arith.constant 0 : i32
    %c0_i32_1 = arith.constant 0 : i32
    return %c0_i32, %c0_i32_0 : i32, i32
  }
  func.func @transform_4(%arg0: i32) -> (i32, i32) {
    %c0_i32 = arith.constant 0 : i32
    %c0_i32_0 = arith.constant 0 : i32
    %c0_i32_1 = arith.constant 0 : i32
    return %c0_i32, %c0_i32_0 : i32, i32
  }
  func.func @transform_5(%arg0: i32) -> (i32, i32) {
    %c0_i32 = arith.constant 0 : i32
    %c0_i32_0 = arith.constant 0 : i32
    %c0_i32_1 = arith.constant 0 : i32
    return %c0_i32, %c0_i32_0 : i32, i32
  }
  func.func @transform_6(%arg0: i32) -> (i32, i32) {
    %c0_i32 = arith.constant 0 : i32
    %c0_i32_0 = arith.constant 0 : i32
    %c0_i32_1 = arith.constant 0 : i32
    return %c0_i32, %c0_i32_0 : i32, i32
  }
  func.func @transform_7(%arg0: i32) -> (i32, i32) {
    %c0_i32 = arith.constant 0 : i32
    %c0_i32_0 = arith.constant 0 : i32
    %c0_i32_1 = arith.constant 0 : i32
    return %c0_i32, %c0_i32_0 : i32, i32
  }
  func.func @transform_8(%arg0: i32) -> (i32, i32) {
    %c0_i32 = arith.constant 0 : i32
    %c0_i32_0 = arith.constant 0 : i32
    %c0_i32_1 = arith.constant 0 : i32
    return %c0_i32, %c0_i32_0 : i32, i32
  }
  func.func @transform_9(%arg0: i32) -> (i32, i32) {
    %c0_i32 = arith.constant 0 : i32
    %c0_i32_0 = arith.constant 0 : i32
    %c0_i32_1 = arith.constant 0 : i32
    return %c0_i32, %c0_i32_0 : i32, i32
  }
  func.func @transform_10(%arg0: i32) -> (i32, i32) {
    %c0_i32 = arith.constant 0 : i32
    %c0_i32_0 = arith.constant 0 : i32
    %c0_i32_1 = arith.constant 0 : i32
    return %c0_i32, %c0_i32_0 : i32, i32
  }
  func.func @transform_11(%arg0: i32) -> (i32, i32) {
    %c0_i32 = arith.constant 0 : i32
    %c0_i32_0 = arith.constant 0 : i32
    %c0_i32_1 = arith.constant 0 : i32
    return %c0_i32, %c0_i32_0 : i32, i32
  }
  func.func @transform_12(%arg0: i32) -> (i32, i32) {
    %c0_i32 = arith.constant 0 : i32
    %c0_i32_0 = arith.constant 0 : i32
    %c0_i32_1 = arith.constant 0 : i32
    return %c0_i32, %c0_i32_0 : i32, i32
  }
  func.func @transform_13(%arg0: i32) -> (i32, i32) {
    %c0_i32 = arith.constant 0 : i32
    %c0_i32_0 = arith.constant 0 : i32
    %c0_i32_1 = arith.constant 0 : i32
    return %c0_i32, %c0_i32_0 : i32, i32
  }
  func.func @transform_14(%arg0: i32) -> (i32, i32) {
    %c0_i32 = arith.constant 0 : i32
    %c0_i32_0 = arith.constant 0 : i32
    %c0_i32_1 = arith.constant 0 : i32
    return %c0_i32, %c0_i32_0 : i32, i32
  }
  func.func @transform_15(%arg0: i32) -> (i32, i32) {
    %c0_i32 = arith.constant 0 : i32
    %c0_i32_0 = arith.constant 0 : i32
    %c0_i32_1 = arith.constant 0 : i32
    return %c0_i32, %c0_i32_0 : i32, i32
  }
  func.func @transform_16(%arg0: i32) -> (i32, i32) {
    %c0_i32 = arith.constant 0 : i32
    %c0_i32_0 = arith.constant 0 : i32
    return %arg0, %c0_i32 : i32, i32
  }
  func.func @transform_17(%arg0: i32) -> (i32, i32) {
    %c0_i32 = arith.constant 0 : i32
    %c0_i32_0 = arith.constant 0 : i32
    return %arg0, %c0_i32 : i32, i32
  }
}

</mosaic_0001>

<bundles_post_ra>
// kernel: tpu_custom_call.1
= control target key start
LH: loop header
LB: loop body
LE: loop exit
PB: predicated region body
PF: predicated region fallthrough
CT: control target
= control target key end

     0   :  { %s3720_s0 = inlined_call_operand.vmem [shape: f32[2], index: 0, kind: input, shape index: {}]   ;;  %s3721_s1 = inlined_call_operand.vmem [shape: f32[256,8], index: 1, kind: input, shape index: {}]   ;;  %s3722_s2 = inlined_call_operand.vmem [shape: f32[256,4], index: 2, kind: input, shape index: {}]   ;;  %s3723_s3 = inlined_call_operand.vmem [shape: f32[8,4], index: 3, kind: input, shape index: {}]   ;;  %s3724_s4 = inlined_call_operand.vmem [shape: f32[1,4], index: 4, kind: input, shape index: {}]   ;;  %s3725_s5 = inlined_call_operand.vmem [shape: f32[8,4], index: 5, kind: input, shape index: {}]   ;;  %s3726_s6 = inlined_call_operand.vmem [shape: f32[1,4], index: 6, kind: input, shape index: {}]   ;;  %s3727_s7 = inlined_call_operand.vmem [shape: f32[4,32], index: 7, kind: input, shape index: {}]   ;;  %s3728_s8 = inlined_call_operand.vmem [shape: f32[4,32], index: 8, kind: input, shape index: {}]   ;;  %s3729_s9 = inlined_call_operand.vmem [shape: f32[1,32], index: 9, kind: input, shape index: {}]   ;;  %s3730_s10 = inlined_call_operand.vmem [shape: f32[32,32], index: 10, kind: input, shape index: {}]   ;;  %s3731_s11 = inlined_call_operand.vmem [shape: f32[1,32], index: 11, kind: input, shape index: {}]   ;;  %s3732_s12 = inlined_call_operand.vmem [shape: f32[32,4], index: 12, kind: input, shape index: {}]   ;;  %s3733_s13 = inlined_call_operand.vmem [shape: f32[1,4], index: 13, kind: input, shape index: {}]   ;;  %s3734_s14 = inlined_call_operand.vmem [shape: f32[32,4], index: 14, kind: input, shape index: {}]   ;;  %s3735_s15 = inlined_call_operand.vmem [shape: f32[1,4], index: 15, kind: input, shape index: {}]   ;;  %s3736_s16 = inlined_call_operand.vmem [shape: f32[256,8], index: 16, kind: output, shape index: {0}]   ;;  %s3737_s17 = inlined_call_operand.vmem [shape: f32[256,1], index: 17, kind: output, shape index: {1}]  }
   0x1   :  { %3738 = sst [smem:[#allocation5_spill]] %s3720_s0 }
   0x2   :  { %3739 = sst [smem:[#allocation6_spill]] %s3721_s1 }
   0x3   :  { %23 = vsyncpa [#allocation3], 0  ;;  %s3068_s24 = smov 0  }
   0x4 LB: > { %s2397_s25 = sadd.s32 4294967295, %s2974_s24   ;;  %p2399_p0 = scmp.ge.s32.totalorder %s2974_s24, 1  ;;  %s2974_s24 = sphi %s3068_s24, %s29_s24  }
   0x5   : > { %p432_p1 = scmp.lt.s32.totalorder %s2974_s24, 3  ;;  %s3740_s28 = sld [smem:[#allocation5_spill]] }
   0x6   : > { %p3083_p3 = scmp.eq.s32.totalorder %s2397_s25, 0 }
   0x7   : > { %p3079_p2 = pnand %p2399_p0, %p432_p1 }
   0x9   : > { %p2869_p4 = pneg %p3079_p2 }
   0xb   : > { %s445_s29 = sshll.u32 %s3740_s28, 4  ;;  %p2870_p5 = pnand %p3083_p3, %p2869_p4  ;;  %s446_s29 = int_to_ptr.vmem [resolvable:$true] %s445_s29 }
   0xc   : > { %s2949_s18 = scalar_lea.vmem %s446_s29, 16  ;;  %p2957_p10 = scmp.lt.s32.totalorder %s446_s29, %s446_s29 }
   0xd   : > { %p2950_p6 = scmp.ne.s32.totalorder %s446_s29, %s2949_s18  ;;  %p2951_p7 = pneg %p2870_p5 }
   0xe   : > { %p2958_p11 = scmp.lt.s32.totalorder %s2949_s18, %s2949_s18 }
   0xf   : > { %p2952_p8 = pnand %p2951_p7, %p2950_p6 }
  0x10   : > { %p2959_p12 = por %p2958_p11, %p2957_p10 }
  0x11   : > { %p2953_p9 = pneg %p2952_p8 }
  0x13   : > { %p2960_p13 = pnand %p2959_p12, %p2953_p9 }
  0x15   : > { %2963 = shalt.err (!%p2960_p13)
}
  0x16   : > { %s2976_s19 = smov [#allocation2]   ;;  %515 = sbr.rel (%p3079_p2) target bundleno = 1143 (0x477), region = 84 }
  0x17   : > { %2872 = dma.vmem_to_smem (!%p2870_p5), %s446_s29, 16, %s2976_s19, [#allocation3]  }
  0x1b   : > { %2969 = dma.done.wait (%p3083_p3), [#allocation3], 16  }
  0x1c   : > { %2971 = vsyncadd (%p3083_p3), [#allocation3], 4294967280 }
  0x1d   : > { %521 = sfence }
  0x1e   : > { %v634_v0 = vld [vmem:[%s3723_s3] sm:$0xff]  ;;  %s2404_s21 = sshll.u32 %s2397_s25, 4  ;;  %vm1040_vm0 = vcmask 1043456   ;;  %vm642_vm1 = vcmask 64512   ;;  %s3743_s0 = sld [smem:[#allocation6_spill]]  ;;  %vm991_vm2 = vcmask 31744  }
  0x1f   : > { %v836_v1 = vld [vmem:[%s3725_s5] sm:$0xff]  ;;  %2663 = vmatprep.subr.mxu0 %v634_v0  ;;  %p579_p0 = scmp.lt.s32.totalorder %s2404_s21, 31  ;;  %2863 = vmatprep.subr.mxu1 %v634_v0  ;;  %v1427_v36 = vld [vmem:[%s3730_s10 + $0x18] sm:$0xff]  ;;  %v1426_v37 = vld [vmem:[%s3730_s10 + $0x10] sm:$0xff]  ;;  %vm1435_vm3 = vcmask 261120   ;;  %s1865_s22 = sld [smem:[#allocation2]] }
  0x20   : > { %v990_v2 = vld [vmem:[%s3728_s8] sm:$0xf]  ;;  %2664 = vmatpush3.msra.mxu0 %v634_v0  ;;  %2864 = vmatpush3.msra.mxu1 %v634_v0  ;;  %v1425_v38 = vld [vmem:[%s3730_s10 + $0x8] sm:$0xff]  ;;  %s2977_s27 = smov 4   ;;  %s2532_s25 = sld [smem:[#allocation2 + $0x1]]  ;;  %vm2266_vm4 = vcmask 7168  }
  0x21   : > { %s3745_s21 = smov (!%p579_p0, %s2404_s21), 31  ;;  %2689 = vmatprep.subr.mxu1 %v836_v1  ;;  %2715 = vmatprep.subr.msk.mxu0 %vm1040_vm0, %v990_v2  ;;  %v989_v7 = vld [vmem:[%s3727_s7] sm:$0xf]  ;;  %vm2183_vm5 = vcmask 64544  }
  0x22   : > { %s3107_s28 = sshll.u32 %s3745_s21, 3  ;;  %v2412_v39 = vld [vmem:[%s3724_s4] ss:$0 sm:$0xff] }
  0x23   : > { %s3173_s21 = scalar_lea.vmem %s3722_s2, %s3107_s28  ;;  %s3223_s1 = scalar_lea.vmem %s3736_s16, %s3107_s28 }
  0x24   : > { %s3113_s30 = scalar_lea.vmem %s3743_s0, %s3107_s28  ;;  %v618_v20 = vld [vmem:[%s3173_s21] sm:$0xff]  ;;  %v619_v21 = vld [vmem:[%s3173_s21 + $0x8] sm:$0xff]  ;;  %v620_v22 = vld [vmem:[%s3173_s21 + $0x10] sm:$0xff] }
  0x25   : > { %v602_v3 = vld [vmem:[%s3113_s30] sm:$0xff]  ;;  %v603_v4 = vld [vmem:[%s3113_s30 + $0x8] sm:$0xff]  ;;  %v604_v5 = vld [vmem:[%s3113_s30 + $0x10] sm:$0xff] }
  0x26   : > { %2665 = vmatprep.mubr.msk.f32.mxu0 %vm642_vm1, %v602_v3  ;;  %v610_v6 = vld [vmem:[%s3113_s30 + $0x40] sm:$0xff]  ;;  %v605_v8 = vld [vmem:[%s3113_s30 + $0x18] sm:$0xff]  ;;  %v611_v9 = vld [vmem:[%s3113_s30 + $0x48] sm:$0xff] }
  0x27   : > { %2666 = vmatmul.mubr.msk.f32.vlgmr.msra.gmra.mxu0 %vm642_vm1, %v603_v4  ;;  %2677 = vmatprep.mubr.msk.f32.mxu1 %vm642_vm1, %v610_v6  ;;  %v612_v10 = vld [vmem:[%s3113_s30 + $0x50] sm:$0xff]  ;;  %v606_v11 = vld [vmem:[%s3113_s30 + $0x20] sm:$0xff]  ;;  %v613_v12 = vld [vmem:[%s3113_s30 + $0x58] sm:$0xff] }
  0x28   : > { %2668 = vmatprep.mubr.msk.f32.mxu0 %vm642_vm1, %v604_v5  ;;  %2678 = vmatmul.mubr.msk.f32.vlgmr.msra.gmra.mxu1 %vm642_vm1, %v611_v9  ;;  %v614_v13 = vld [vmem:[%s3113_s30 + $0x60] sm:$0xff]  ;;  %v607_v14 = vld [vmem:[%s3113_s30 + $0x28] sm:$0xff]  ;;  %v608_v15 = vld [vmem:[%s3113_s30 + $0x30] sm:$0xff] }
  0x29   : > { %2716 = vmatpush3.msk.msra.mxu0 %vm1040_vm0, %v990_v2  ;;  %2680 = vmatprep.mubr.msk.f32.mxu1 %vm642_vm1, %v612_v10  ;;  %v615_v16 = vld [vmem:[%s3113_s30 + $0x68] sm:$0xff]  ;;  %v616_v17 = vld [vmem:[%s3113_s30 + $0x70] sm:$0xff]  ;;  %v609_v18 = vld [vmem:[%s3113_s30 + $0x38] sm:$0xff] }
  0x2a   : > { %2690 = vmatpush3.msra.mxu1 %v836_v1  ;;  %v617_v19 = vld [vmem:[%s3113_s30 + $0x78] sm:$0xff]  ;;  %v622_v24 = vld [vmem:[%s3173_s21 + $0x20] sm:$0xff]  ;;  %v623_v25 = vld [vmem:[%s3173_s21 + $0x28] sm:$0xff]  ;;  %2767 = vmatprep.subr.mxu0 %v1427_v36  ;;  %s3625_s30 = scalar_lea.vmem %s3737_s17, %s3107_s28 }
  0x2b   : > { %2669 = vmatmul.mubr.msk.f32.gmra.mxu0 %vm642_vm1, %v605_v8  ;;  %2741 = vmatprep.subr.msk.mxu1 %vm1040_vm0, %v989_v7  ;;  %v621_v23 = vld [vmem:[%s3173_s21 + $0x18] sm:$0xff]  ;;  %v624_v26 = vld [vmem:[%s3173_s21 + $0x30] sm:$0xff]  ;;  %v626_v28 = vld [vmem:[%s3173_s21 + $0x40] sm:$0xff] }
  0x2c   : > { %2671 = vmatprep.mubr.msk.f32.mxu0 %vm642_vm1, %v606_v11  ;;  %2681 = vmatmul.mubr.msk.f32.gmra.mxu1 %vm642_vm1, %v613_v12  ;;  %v625_v27 = vld [vmem:[%s3173_s21 + $0x38] sm:$0xff]  ;;  %v627_v29 = vld [vmem:[%s3173_s21 + $0x48] sm:$0xff]  ;;  %v628_v30 = vld [vmem:[%s3173_s21 + $0x50] sm:$0xff] }
  0x2d   : > { %2683 = vmatprep.mubr.msk.f32.mxu1 %vm642_vm1, %v614_v13  ;;  %v629_v31 = vld [vmem:[%s3173_s21 + $0x58] sm:$0xff]  ;;  %v630_v32 = vld [vmem:[%s3173_s21 + $0x60] sm:$0xff]  ;;  %v631_v33 = vld [vmem:[%s3173_s21 + $0x68] sm:$0xff] }
  0x2e   : > { %v632_v34 = vld [vmem:[%s3173_s21 + $0x70] sm:$0xff]  ;;  %v633_v35 = vld [vmem:[%s3173_s21 + $0x78] sm:$0xff] }
  0x2f   : > { %2672 = vmatmul.mubr.msk.f32.gmra.mxu0 %vm642_vm1, %v607_v14 }
  0x30   : > { %2674 = vmatprep.mubr.msk.f32.mxu0 %vm642_vm1, %v608_v15  ;;  %2684 = vmatmul.mubr.msk.f32.gmra.mxu1 %vm642_vm1, %v615_v16 }
  0x31   : > { %2686 = vmatprep.mubr.msk.f32.mxu1 %vm642_vm1, %v616_v17 }
  0x33   : > { %2675 = vmatmul.mubr.msk.f32.gmra.mxu0 %vm642_vm1, %v609_v18 }
  0x34   : > { %2687 = vmatmul.mubr.msk.f32.gmra.mxu1 %vm642_vm1, %v617_v19  ;;  %2717 = vmatprep.mubr.msk.f32.mxu0 %vm991_vm2, %v618_v20 }
  0x35   : > { %2691 = vmatprep.mubr.msk.f32.mxu1 %vm642_vm1, %v602_v3 }
  0x37   : > { %2718 = vmatmul.mubr.msk.f32.vlgmr.msra.gmra.mxu0 %vm991_vm2, %v619_v21 }
  0x38   : > { %2692 = vmatmul.mubr.msk.f32.vlgmr.msra.gmra.mxu1 %vm642_vm1, %v603_v4  ;;  %2720 = vmatprep.mubr.msk.f32.mxu0 %vm991_vm2, %v620_v22 }
  0x39   : > { %2742 = vmatpush3.msk.msra.mxu1 %vm1040_vm0, %v989_v7  ;;  %2694 = vmatprep.mubr.msk.f32.mxu1 %vm642_vm1, %v604_v5 }
  0x3a   : > { %2768 = vmatpush3.msra.mxu0 %v1427_v36  ;;  %v1646_v36 = vld [vmem:[%s3732_s12 + $0x8] sm:$0xff] }
  0x3b   : > { %2721 = vmatmul.mubr.msk.f32.gmra.mxu0 %vm991_vm2, %v621_v23  ;;  %2769 = vmatprep.subr.mxu0 %v1426_v37 }
  0x3c   : > { %2695 = vmatmul.mubr.msk.f32.gmra.mxu1 %vm642_vm1, %v605_v8  ;;  %2723 = vmatprep.mubr.msk.f32.mxu0 %vm991_vm2, %v622_v24 }
  0x3d   : > { %2697 = vmatprep.mubr.msk.f32.mxu1 %vm642_vm1, %v606_v11  ;;  %2770 = vmatpush3.msra.mxu0 %v1426_v37  ;;  %v1645_v37 = vld [vmem:[%s3732_s12] sm:$0xff] }
  0x3e   : > { %2771 = vmatprep.subr.mxu0 %v1425_v38 }
  0x3f   : > { %2724 = vmatmul.mubr.msk.f32.gmra.mxu0 %vm991_vm2, %v623_v25 }
  0x40   : > { %2698 = vmatmul.mubr.msk.f32.gmra.mxu1 %vm642_vm1, %v607_v14  ;;  %2726 = vmatprep.mubr.msk.f32.mxu0 %vm991_vm2, %v624_v26  ;;  %v3286_v14 = vld [vmem:[%s3726_s6] ss:$0 sm:$0xff] }
  0x41   : > { %2700 = vmatprep.mubr.msk.f32.mxu1 %vm642_vm1, %v608_v15  ;;  %2772 = vmatpush3.msra.mxu0 %v1425_v38 }
  0x43   : > { %2727 = vmatmul.mubr.msk.f32.gmra.mxu0 %vm991_vm2, %v625_v27 }
  0x44   : > { %2701 = vmatmul.mubr.msk.f32.gmra.mxu1 %vm642_vm1, %v609_v18  ;;  %2729 = vmatprep.mubr.msk.f32.mxu0 %vm991_vm2, %v626_v28 }
  0x45   : > { %2703 = vmatprep.mubr.msk.f32.mxu1 %vm642_vm1, %v610_v6 }
  0x47   : > { %2730 = vmatmul.mubr.msk.f32.gmra.mxu0 %vm991_vm2, %v627_v29 }
  0x48   : > { %2704 = vmatmul.mubr.msk.f32.gmra.mxu1 %vm642_vm1, %v611_v9  ;;  %2732 = vmatprep.mubr.msk.f32.mxu0 %vm991_vm2, %v628_v30 }
  0x49   : > { %2706 = vmatprep.mubr.msk.f32.mxu1 %vm642_vm1, %v612_v10 }
  0x4b   : > { %2733 = vmatmul.mubr.msk.f32.gmra.mxu0 %vm991_vm2, %v629_v31 }
  0x4c   : > { %2707 = vmatmul.mubr.msk.f32.gmra.mxu1 %vm642_vm1, %v613_v12  ;;  %2735 = vmatprep.mubr.msk.f32.mxu0 %vm991_vm2, %v630_v32 }
  0x4d   : > { %2709 = vmatprep.mubr.msk.f32.mxu1 %vm642_vm1, %v614_v13 }
  0x4f   : > { %2736 = vmatmul.mubr.msk.f32.gmra.mxu0 %vm991_vm2, %v631_v33  ;;  %v1424_v33 = vld [vmem:[%s3730_s10] sm:$0xff] }
  0x50   : > { %2710 = vmatmul.mubr.msk.f32.gmra.mxu1 %vm642_vm1, %v615_v16  ;;  %2738 = vmatprep.mubr.msk.f32.mxu0 %vm991_vm2, %v632_v34  ;;  %v1648_v34 = vld [vmem:[%s3732_s12 + $0x18] sm:$0xff] }
  0x51   : > { %2712 = vmatprep.mubr.msk.f32.mxu1 %vm642_vm1, %v616_v17  ;;  %2773 = vmatprep.subr.mxu0 %v1424_v33 }
  0x52   : > { %2774 = vmatpush3.msra.mxu0 %v1424_v33  ;;  %2799 = vmatprep.subr.mxu1 %v1648_v34 }
  0x53   : > { %2739 = vmatmul.mubr.msk.f32.gmra.mxu0 %vm991_vm2, %v633_v35  ;;  %v1647_v35 = vld [vmem:[%s3732_s12 + $0x10] sm:$0xff] }
  0x54   : > { %2713 = vmatmul.mubr.msk.f32.gmra.mxu1 %vm642_vm1, %v617_v19 }
  0xe7   : > { %v2667_v40 = vpop.f32.mrf.mxu0 }
  0xe8   : > { %v763_v41 = vadd.f32 %v2667_v40, %v2412_v39  ;;  %v2679_v43 = vpop.f32.mrf.mxu1 }
  0xe9   : > { %v757_v42 = vpop.f32.mrf.mxu0  ;;  %v803_v45 = vadd.f32 %v2679_v43, %v2412_v39 }
  0xea   : > { %2104 = vst.msk [vmem:[%s3223_s1 + $0x8] sm:$0xff] %vm991_vm2, %v763_v41  ;;  %v758_v44 = vadd.f32 %v2412_v39, %v757_v42  ;;  %v797_v47 = vpop.f32.mrf.mxu1 }
  0xeb   : > { %v2670_v46 = vpop.f32.mrf.mxu0  ;;  %2112 = vst.msk [vmem:[%s3223_s1 + $0x48] sm:$0xff] %vm991_vm2, %v803_v45  ;;  %v798_v49 = vadd.f32 %v2412_v39, %v797_v47 }
  0xec   : > { %2103 = vst.msk [vmem:[%s3223_s1] sm:$0xff] %vm991_vm2, %v758_v44  ;;  %v773_v48 = vadd.f32 %v2670_v46, %v2412_v39  ;;  %2743 = vmatprep.mubr.msk.f32.mxu1 %vm991_vm2, %v758_v44  ;;  %v2682_v51 = vpop.f32.mrf.mxu1 }
  0xed   : > { %v767_v50 = vpop.f32.mrf.mxu0  ;;  %2744 = vmatmul.mubr.msk.f32.vlgmr.msra.gmra.mxu1 %vm991_vm2, %v763_v41  ;;  %2111 = vst.msk [vmem:[%s3223_s1 + $0x40] sm:$0xff] %vm991_vm2, %v798_v49  ;;  %v813_v53 = vadd.f32 %v2682_v51, %v2412_v39 }
  0xee   : > { %2106 = vst.msk [vmem:[%s3223_s1 + $0x18] sm:$0xff] %vm991_vm2, %v773_v48  ;;  %v768_v52 = vadd.f32 %v2412_v39, %v767_v50  ;;  %v807_v55 = vpop.f32.mrf.mxu1  ;;  %2800 = vmatpush3.msra.mxu1 %v1648_v34 }
  0xef   : > { %v2673_v54 = vpop.f32.mrf.mxu0  ;;  %2114 = vst.msk [vmem:[%s3223_s1 + $0x58] sm:$0xff] %vm991_vm2, %v813_v53  ;;  %v808_v57 = vadd.f32 %v2412_v39, %v807_v55  ;;  %2801 = vmatprep.subr.mxu1 %v1647_v35 }
  0xf0   : > { %2105 = vst.msk [vmem:[%s3223_s1 + $0x10] sm:$0xff] %vm991_vm2, %v768_v52  ;;  %v783_v56 = vadd.f32 %v2673_v54, %v2412_v39  ;;  %2746 = vmatprep.mubr.msk.f32.mxu1 %vm991_vm2, %v768_v52  ;;  %v2685_v59 = vpop.f32.mrf.mxu1  ;;  %2802 = vmatpush3.msra.mxu1 %v1647_v35 }
  0xf1   : > { %v777_v58 = vpop.f32.mrf.mxu0  ;;  %2747 = vmatmul.mubr.msk.f32.gmra.mxu1 %vm991_vm2, %v773_v48  ;;  %2113 = vst.msk [vmem:[%s3223_s1 + $0x50] sm:$0xff] %vm991_vm2, %v808_v57  ;;  %v823_v61 = vadd.f32 %v2685_v59, %v2412_v39  ;;  %2803 = vmatprep.subr.mxu1 %v1646_v36 }
  0xf2   : > { %2108 = vst.msk [vmem:[%s3223_s1 + $0x28] sm:$0xff] %vm991_vm2, %v783_v56  ;;  %v778_v60 = vadd.f32 %v2412_v39, %v777_v58  ;;  %v817_v63 = vpop.f32.mrf.mxu1  ;;  %2804 = vmatpush3.msra.mxu1 %v1646_v36 }
  0xf3   : > { %v2676_v62 = vpop.f32.mrf.mxu0  ;;  %2116 = vst.msk [vmem:[%s3223_s1 + $0x68] sm:$0xff] %vm991_vm2, %v823_v61  ;;  %v818_v1 = vadd.f32 %v2412_v39, %v817_v63  ;;  %2805 = vmatprep.subr.mxu1 %v1645_v37 }
  0xf4   : > { %2107 = vst.msk [vmem:[%s3223_s1 + $0x20] sm:$0xff] %vm991_vm2, %v778_v60  ;;  %v793_v0 = vadd.f32 %v2676_v62, %v2412_v39  ;;  %2749 = vmatprep.mubr.msk.f32.mxu1 %vm991_vm2, %v778_v60  ;;  %v2688_v3 = vpop.f32.mrf.mxu1  ;;  %2806 = vmatpush3.msra.mxu1 %v1645_v37 }
  0xf5   : > { %v787_v2 = vpop.f32.mrf.mxu0  ;;  %2750 = vmatmul.mubr.msk.f32.gmra.mxu1 %vm991_vm2, %v783_v56  ;;  %2115 = vst.msk [vmem:[%s3223_s1 + $0x60] sm:$0xff] %vm991_vm2, %v818_v1  ;;  %v833_v5 = vadd.f32 %v2688_v3, %v2412_v39 }
  0xf6   : > { %2110 = vst.msk [vmem:[%s3223_s1 + $0x38] sm:$0xff] %vm991_vm2, %v793_v0  ;;  %v788_v4 = vadd.f32 %v2412_v39, %v787_v2  ;;  %v827_v6 = vpop.f32.mrf.mxu1 }
  0xf7   : > { %2118 = vst.msk [vmem:[%s3223_s1 + $0x78] sm:$0xff] %vm991_vm2, %v833_v5  ;;  %v828_v7 = vadd.f32 %v2412_v39, %v827_v6  ;;  %v2719_v38 = vpop.f32.mrf.mxu0 }
  0xf8   : > { %2109 = vst.msk [vmem:[%s3223_s1 + $0x30] sm:$0xff] %vm991_vm2, %v788_v4  ;;  %2752 = vmatprep.mubr.msk.f32.mxu1 %vm991_vm2, %v788_v4  ;;  %v3263_v8 = vpop.f32.mrf.mxu1 }
  0xf9   : > { %2753 = vmatmul.mubr.msk.f32.gmra.mxu1 %vm991_vm2, %v793_v0  ;;  %2117 = vst.msk [vmem:[%s3223_s1 + $0x70] sm:$0xff] %vm991_vm2, %v828_v7  ;;  %v1110_v39 = vpop.f32.mrf.mxu0 }
  0xfa   : > { %2755 = vmatprep.mubr.msk.f32.mxu1 %vm991_vm2, %v798_v49  ;;  %v3268_v9 = vpop.f32.mrf.mxu1  ;;  %v3337_v49 = vld [vmem:[%s3729_s9] ss:$0 sm:$0xff] }
  0xfb   : > { %v2722_v40 = vpop.f32.mrf.mxu0 }
  0xfc   : > { %v3271_v10 = vpop.f32.mrf.mxu1 }
  0xfd   : > { %2756 = vmatmul.mubr.msk.f32.gmra.mxu1 %vm991_vm2, %v803_v45  ;;  %v1120_v41 = vpop.f32.mrf.mxu0 }
  0xfe   : > { %2758 = vmatprep.mubr.msk.f32.mxu1 %vm991_vm2, %v808_v57  ;;  %v3274_v11 = vpop.f32.mrf.mxu1 }
  0xff   : > { %v2725_v42 = vpop.f32.mrf.mxu0 }
 0x100   : > { %v3277_v12 = vpop.f32.mrf.mxu1 }
 0x101   : > { %2759 = vmatmul.mubr.msk.f32.gmra.mxu1 %vm991_vm2, %v813_v53  ;;  %v1130_v43 = vpop.f32.mrf.mxu0 }
 0x102   : > { %2761 = vmatprep.mubr.msk.f32.mxu1 %vm991_vm2, %v818_v1  ;;  %v3280_v13 = vpop.f32.mrf.mxu1 }
 0x103   : > { %v2728_v44 = vpop.f32.mrf.mxu0 }
 0x104   : > { %v2702_v15 = vpop.f32.mrf.mxu1 }
 0x105   : > { %2762 = vmatmul.mubr.msk.f32.gmra.mxu1 %vm991_vm2, %v823_v61  ;;  %v3290_v16 = vadd.f32 %v2702_v15, %v3286_v14  ;;  %v1140_v46 = vpop.f32.mrf.mxu0 }
 0x106   : > { %2764 = vmatprep.mubr.msk.f32.mxu1 %vm991_vm2, %v828_v7  ;;  %v940_v17 = vpop.f32.mrf.mxu1 }
 0x107   : > { %v3293_v18 = vadd.f32 %v3286_v14, %v940_v17  ;;  %v2731_v51 = vpop.f32.mrf.mxu0 }
 0x108   : > { %v2705_v19 = vpop.f32.mrf.mxu1 }
 0x109   : > { %2765 = vmatmul.mubr.msk.f32.gmra.mxu1 %vm991_vm2, %v833_v5  ;;  %v3297_v20 = vadd.f32 %v2705_v19, %v3286_v14  ;;  %v1150_v58 = vpop.f32.mrf.mxu0 }
 0x10a   : > { %v950_v21 = vpop.f32.mrf.mxu1 }
 0x10b   : > { %v3300_v22 = vadd.f32 %v3286_v14, %v950_v21  ;;  %v2734_v0 = vpop.f32.mrf.mxu0 }
 0x10c   : > { %v2708_v23 = vpop.f32.mrf.mxu1 }
 0x10d   : > { %v3303_v24 = vadd.f32 %v2708_v23, %v3286_v14  ;;  %v1160_v17 = vpop.f32.mrf.mxu0 }
 0x10e   : > { %v960_v25 = vpop.f32.mrf.mxu1 }
 0x10f   : > { %v3306_v26 = vadd.f32 %v3286_v14, %v960_v25  ;;  %v2737_v34 = vpop.f32.mrf.mxu0 }
 0x110   : > { %v2711_v27 = vpop.f32.mrf.mxu1 }
 0x111   : > { %v3309_v28 = vadd.f32 %v2711_v27, %v3286_v14 }
 0x112   : > { %v970_v29 = vpop.f32.mrf.mxu1 }
 0x113   : > { %v3312_v30 = vadd.f32 %v3286_v14, %v970_v29 }
 0x114   : > { %v2714_v31 = vpop.f32.mrf.mxu1 }
 0x115   : > { %v3315_v32 = vadd.f32 %v2714_v31, %v3286_v14 }
 0x116   : > { %v3332_v45 = vpop.f32.mrf.mxu1 }
 0x1ad   : > { %v2745_v47 = vpop.f32.mrf.mxu1 }
 0x1ae   : > { %v1312_v48 = vadd.f32 %v2745_v47, %v2719_v38 }
 0x1af   : > { %v1306_v50 = vpop.f32.mrf.mxu1 }
 0x1b0   : > { %v1307_v52 = vadd.f32 %v1306_v50, %v1110_v39  ;;  %v1393_v53 = vadd.f32 %v3337_v49, %v1312_v48 }
 0x1b1   : > { %v2748_v54 = vpop.f32.mrf.mxu1 }
 0x1b2   : > { %v1392_v55 = vadd.f32 %v3337_v49, %v1307_v52  ;;  %v1322_v56 = vadd.f32 %v2748_v54, %v2722_v40  ;;  %v1409_v61 = vmax.f32 %v1393_v53, 0.0 }
 0x1b3   : > { %v1316_v57 = vpop.f32.mrf.mxu1 }
 0x1b4   : > { %v1408_v59 = vmax.f32 %v1392_v55, 0.0  ;;  %v1317_v60 = vadd.f32 %v1316_v57, %v1120_v41  ;;  %v1395_v62 = vadd.f32 %v3337_v49, %v1322_v56 }
 0x1b5   : > { %v2751_v63 = vpop.f32.mrf.mxu1 }
 0x1b6   : > { %v1394_v1 = vadd.f32 %v3337_v49, %v1317_v60  ;;  %v1332_v2 = vadd.f32 %v2751_v63, %v2725_v42  ;;  %2775 = vmatprep.mubr.msk.f32.mxu0 %vm1435_vm3, %v1408_v59  ;;  %v1411_v6 = vmax.f32 %v1395_v62, 0.0 }
 0x1b7   : > { %v1326_v3 = vpop.f32.mrf.mxu1  ;;  %2776 = vmatmul.mubr.msk.f32.vlgmr.msra.gmra.mxu0 %vm1435_vm3, %v1409_v61 }
 0x1b8   : > { %v1410_v4 = vmax.f32 %v1394_v1, 0.0  ;;  %v1327_v5 = vadd.f32 %v1326_v3, %v1130_v43  ;;  %v1397_v7 = vadd.f32 %v3337_v49, %v1332_v2  ;;  %v1170_v43 = vpop.f32.mrf.mxu0 }
 0x1b9   : > { %v2754_v15 = vpop.f32.mrf.mxu1 }
 0x1ba   : > { %v1396_v19 = vadd.f32 %v3337_v49, %v1327_v5  ;;  %v1342_v21 = vadd.f32 %v2754_v15, %v2728_v44  ;;  %2778 = vmatprep.mubr.msk.f32.mxu0 %vm1435_vm3, %v1410_v4  ;;  %v1413_v29 = vmax.f32 %v1397_v7, 0.0  ;;  %v2740_v54 = vpop.f32.mrf.mxu0 }
 0x1bb   : > { %v1336_v23 = vpop.f32.mrf.mxu1  ;;  %2779 = vmatmul.mubr.msk.f32.gmra.mxu0 %vm1435_vm3, %v1411_v6 }
 0x1bc   : > { %v1412_v25 = vmax.f32 %v1396_v19, 0.0  ;;  %v1337_v27 = vadd.f32 %v1336_v23, %v1140_v46  ;;  %v1399_v31 = vadd.f32 %v3337_v49, %v1342_v21  ;;  %v1180_v63 = vpop.f32.mrf.mxu0  ;;  %v1886_v19 = vld [vmem:[%s3734_s14 + $0x18] sm:$0xff]  ;;  %v1884_v21 = vld [vmem:[%s3734_s14 + $0x8] sm:$0xff]  ;;  %v1883_v23 = vld [vmem:[%s3734_s14] sm:$0xff] }
 0x1bd   : > { %v2757_v33 = vpop.f32.mrf.mxu1  ;;  %2831 = vmatprep.subr.mxu0 %v1886_v19 }
 0x1be   : > { %v1398_v35 = vadd.f32 %v3337_v49, %v1337_v27  ;;  %v1352_v36 = vadd.f32 %v2757_v33, %v2731_v51  ;;  %2781 = vmatprep.mubr.msk.f32.mxu0 %vm1435_vm3, %v1412_v25  ;;  %v1415_v40 = vmax.f32 %v1399_v31, 0.0  ;;  %2832 = vmatpush3.msra.mxu0 %v1886_v19  ;;  %v3386_v25 = vld [vmem:[%s3731_s11] ss:$0 sm:$0xff] }
 0x1bf   : > { %v1346_v37 = vpop.f32.mrf.mxu1  ;;  %2782 = vmatmul.mubr.msk.f32.gmra.mxu0 %vm1435_vm3, %v1413_v29 }
 0x1c0   : > { %v1414_v38 = vmax.f32 %v1398_v35, 0.0  ;;  %v1347_v39 = vadd.f32 %v1346_v37, %v1150_v58  ;;  %v1401_v41 = vadd.f32 %v3337_v49, %v1352_v36 }
 0x1c1   : > { %v2760_v42 = vpop.f32.mrf.mxu1 }
 0x1c2   : > { %v1400_v44 = vadd.f32 %v3337_v49, %v1347_v39  ;;  %v1362_v46 = vadd.f32 %v2760_v42, %v2734_v0  ;;  %2784 = vmatprep.mubr.msk.f32.mxu0 %vm1435_vm3, %v1414_v38  ;;  %v1417_v52 = vmax.f32 %v1401_v41, 0.0 }
 0x1c3   : > { %v1356_v47 = vpop.f32.mrf.mxu1  ;;  %2785 = vmatmul.mubr.msk.f32.gmra.mxu0 %vm1435_vm3, %v1415_v40 }
 0x1c4   : > { %v1416_v48 = vmax.f32 %v1400_v44, 0.0  ;;  %v1403_v50 = vadd.f32 %v3337_v49, %v1362_v46  ;;  %v1357_v51 = vadd.f32 %v1356_v47, %v1160_v17 }
 0x1c5   : > { %v2763_v53 = vpop.f32.mrf.mxu1 }
 0x1c6   : > { %v1402_v55 = vadd.f32 %v3337_v49, %v1357_v51  ;;  %v1372_v56 = vadd.f32 %v2763_v53, %v2737_v34  ;;  %2787 = vmatprep.mubr.msk.f32.mxu0 %vm1435_vm3, %v1416_v48  ;;  %v1419_v57 = vmax.f32 %v1403_v50, 0.0 }
 0x1c7   : > { %v1366_v58 = vpop.f32.mrf.mxu1  ;;  %2788 = vmatmul.mubr.msk.f32.gmra.mxu0 %vm1435_vm3, %v1417_v52 }
 0x1c8   : > { %v1418_v59 = vmax.f32 %v1402_v55, 0.0  ;;  %v1405_v60 = vadd.f32 %v3337_v49, %v1372_v56  ;;  %v1367_v61 = vadd.f32 %v1366_v58, %v1170_v43 }
 0x1c9   : > { %v2766_v62 = vpop.f32.mrf.mxu1 }
 0x1ca   : > { %v1404_v0 = vadd.f32 %v3337_v49, %v1367_v61  ;;  %v1382_v1 = vadd.f32 %v2766_v62, %v2740_v54  ;;  %2790 = vmatprep.mubr.msk.f32.mxu0 %vm1435_vm3, %v1418_v59  ;;  %v1421_v2 = vmax.f32 %v1405_v60, 0.0 }
 0x1cb   : > { %v1376_v3 = vpop.f32.mrf.mxu1  ;;  %2791 = vmatmul.mubr.msk.f32.gmra.mxu0 %vm1435_vm3, %v1419_v57 }
 0x1cc   : > { %v1420_v4 = vmax.f32 %v1404_v0, 0.0  ;;  %v1407_v5 = vadd.f32 %v3337_v49, %v1382_v1  ;;  %v1377_v6 = vadd.f32 %v1376_v3, %v1180_v63 }
 0x1ce   : > { %v1406_v7 = vadd.f32 %v3337_v49, %v1377_v6  ;;  %2793 = vmatprep.mubr.msk.f32.mxu0 %vm1435_vm3, %v1420_v4  ;;  %v1423_v15 = vmax.f32 %v1407_v5, 0.0  ;;  %v1885_v49 = vld [vmem:[%s3734_s14 + $0x10] sm:$0xff] }
 0x1cf   : > { %2794 = vmatmul.mubr.msk.f32.gmra.mxu0 %vm1435_vm3, %v1421_v2  ;;  %2833 = vmatprep.subr.mxu0 %v1885_v49 }
 0x1d0   : > { %v1422_v17 = vmax.f32 %v1406_v7, 0.0  ;;  %2834 = vmatpush3.msra.mxu0 %v1885_v49 }
 0x1d1   : > { %2835 = vmatprep.subr.mxu0 %v1884_v21 }
 0x1d2   : > { %2796 = vmatprep.mubr.msk.f32.mxu0 %vm1435_vm3, %v1422_v17  ;;  %2836 = vmatpush3.msra.mxu0 %v1884_v21 }
 0x1d3   : > { %2797 = vmatmul.mubr.msk.f32.gmra.mxu0 %vm1435_vm3, %v1423_v15  ;;  %2837 = vmatprep.subr.mxu0 %v1883_v23 }
 0x1d4   : > { %2838 = vmatpush3.msra.mxu0 %v1883_v23 }
 0x277   : > { %v2777_v27 = vpop.f32.mrf.mxu0 }
 0x278   : > { %v1556_v29 = vadd.f32 %v2777_v27, %v3386_v25 }
 0x279   : > { %v1550_v31 = vpop.f32.mrf.mxu0 }
 0x27a   : > { %v1551_v33 = vadd.f32 %v3386_v25, %v1550_v31  ;;  %v1630_v36 = vmax.f32 %v1556_v29, 0.0 }
 0x27b   : > { %v2780_v34 = vpop.f32.mrf.mxu0 }
 0x27c   : > { %v1629_v35 = vmax.f32 %v1551_v33, 0.0  ;;  %v1566_v37 = vadd.f32 %v2780_v34, %v3386_v25 }
 0x27d   : > { %v1560_v38 = vpop.f32.mrf.mxu0 }
 0x27e   : > { %v1561_v39 = vadd.f32 %v3386_v25, %v1560_v38  ;;  %2807 = vmatprep.mubr.msk.f32.mxu1 %vm1435_vm3, %v1629_v35  ;;  %2839 = vmatprep.mubr.msk.f32.mxu0 %vm1435_vm3, %v1629_v35  ;;  %v1632_v42 = vmax.f32 %v1566_v37, 0.0 }
 0x27f   : > { %v2783_v40 = vpop.f32.mrf.mxu0  ;;  %2808 = vmatmul.mubr.msk.f32.vlgmr.msra.gmra.mxu1 %vm1435_vm3, %v1630_v36  ;;  %2840 = vmatmul.mubr.msk.f32.vlgmr.msra.gmra.mxu0 %vm1435_vm3, %v1630_v36 }
 0x280   : > { %v1631_v41 = vmax.f32 %v1561_v39, 0.0  ;;  %v1576_v43 = vadd.f32 %v2783_v40, %v3386_v25 }
 0x281   : > { %v1570_v44 = vpop.f32.mrf.mxu0 }
 0x282   : > { %v1571_v46 = vadd.f32 %v3386_v25, %v1570_v44  ;;  %2810 = vmatprep.mubr.msk.f32.mxu1 %vm1435_vm3, %v1631_v41  ;;  %2842 = vmatprep.mubr.msk.f32.mxu0 %vm1435_vm3, %v1631_v41  ;;  %v1634_v50 = vmax.f32 %v1576_v43, 0.0 }
 0x283   : > { %v2786_v47 = vpop.f32.mrf.mxu0  ;;  %2811 = vmatmul.mubr.msk.f32.gmra.mxu1 %vm1435_vm3, %v1632_v42  ;;  %2843 = vmatmul.mubr.msk.f32.gmra.mxu0 %vm1435_vm3, %v1632_v42 }
 0x284   : > { %v1633_v48 = vmax.f32 %v1571_v46, 0.0  ;;  %v1586_v51 = vadd.f32 %v2786_v47, %v3386_v25 }
 0x285   : > { %v1580_v52 = vpop.f32.mrf.mxu0 }
 0x286   : > { %v1581_v53 = vadd.f32 %v3386_v25, %v1580_v52  ;;  %2813 = vmatprep.mubr.msk.f32.mxu1 %vm1435_vm3, %v1633_v48  ;;  %2845 = vmatprep.mubr.msk.f32.mxu0 %vm1435_vm3, %v1633_v48  ;;  %v1636_v56 = vmax.f32 %v1586_v51, 0.0  ;;  %v3454_v51 = vstv %s1865_s22 }
 0x287   : > { %v2789_v54 = vpop.f32.mrf.mxu0  ;;  %2814 = vmatmul.mubr.msk.f32.gmra.mxu1 %vm1435_vm3, %v1634_v50  ;;  %2846 = vmatmul.mubr.msk.f32.gmra.mxu0 %vm1435_vm3, %v1634_v50 }
 0x288   : > { %v1635_v55 = vmax.f32 %v1581_v53, 0.0  ;;  %v1596_v57 = vadd.f32 %v2789_v54, %v3386_v25 }
 0x289   : > { %v1590_v58 = vpop.f32.mrf.mxu0 }
 0x28a   : > { %v1591_v59 = vadd.f32 %v3386_v25, %v1590_v58  ;;  %2816 = vmatprep.mubr.msk.f32.mxu1 %vm1435_vm3, %v1635_v55  ;;  %2848 = vmatprep.mubr.msk.f32.mxu0 %vm1435_vm3, %v1635_v55  ;;  %v1638_v63 = vmax.f32 %v1596_v57, 0.0 }
 0x28b   : > { %v2792_v60 = vpop.f32.mrf.mxu0  ;;  %2817 = vmatmul.mubr.msk.f32.gmra.mxu1 %vm1435_vm3, %v1636_v56  ;;  %2849 = vmatmul.mubr.msk.f32.gmra.mxu0 %vm1435_vm3, %v1636_v56 }
 0x28c   : > { %v1637_v61 = vmax.f32 %v1591_v59, 0.0  ;;  %v1606_v62 = vadd.f32 %v2792_v60, %v3386_v25 }
 0x28d   : > { %v1600_v0 = vpop.f32.mrf.mxu0 }
 0x28e   : > { %v1601_v1 = vadd.f32 %v3386_v25, %v1600_v0  ;;  %2819 = vmatprep.mubr.msk.f32.mxu1 %vm1435_vm3, %v1637_v61  ;;  %2851 = vmatprep.mubr.msk.f32.mxu0 %vm1435_vm3, %v1637_v61  ;;  %v1640_v2 = vmax.f32 %v1606_v62, 0.0 }
 0x28f   : > { %v2795_v3 = vpop.f32.mrf.mxu0  ;;  %2820 = vmatmul.mubr.msk.f32.gmra.mxu1 %vm1435_vm3, %v1638_v63  ;;  %2852 = vmatmul.mubr.msk.f32.gmra.mxu0 %vm1435_vm3, %v1638_v63 }
 0x290   : > { %v1639_v4 = vmax.f32 %v1601_v1, 0.0  ;;  %v1616_v5 = vadd.f32 %v2795_v3, %v3386_v25 }
 0x291   : > { %v1610_v6 = vpop.f32.mrf.mxu0 }
 0x292   : > { %v1611_v7 = vadd.f32 %v3386_v25, %v1610_v6  ;;  %2822 = vmatprep.mubr.msk.f32.mxu1 %vm1435_vm3, %v1639_v4  ;;  %2854 = vmatprep.mubr.msk.f32.mxu0 %vm1435_vm3, %v1639_v4  ;;  %v1642_v15 = vmax.f32 %v1616_v5, 0.0 }
 0x293   : > { %v2798_v17 = vpop.f32.mrf.mxu0  ;;  %2823 = vmatmul.mubr.msk.f32.gmra.mxu1 %vm1435_vm3, %v1640_v2  ;;  %2855 = vmatmul.mubr.msk.f32.gmra.mxu0 %vm1435_vm3, %v1640_v2 }
 0x294   : > { %v1641_v19 = vmax.f32 %v1611_v7, 0.0  ;;  %v1626_v49 = vadd.f32 %v2798_v17, %v3386_v25 }
 0x295   : > { %v1620_v21 = vpop.f32.mrf.mxu0 }
 0x296   : > { %v1621_v23 = vadd.f32 %v3386_v25, %v1620_v21  ;;  %2825 = vmatprep.mubr.msk.f32.mxu1 %vm1435_vm3, %v1641_v19  ;;  %2857 = vmatprep.mubr.msk.f32.mxu0 %vm1435_vm3, %v1641_v19  ;;  %v1644_v27 = vmax.f32 %v1626_v49, 0.0  ;;  %v3439_v25 = vld [vmem:[%s3733_s13] ss:$0 sm:$0xff] }
 0x297   : > { %2826 = vmatmul.mubr.msk.f32.gmra.mxu1 %vm1435_vm3, %v1642_v15  ;;  %2858 = vmatmul.mubr.msk.f32.gmra.mxu0 %vm1435_vm3, %v1642_v15 }
 0x298   : > { %v1643_v29 = vmax.f32 %v1621_v23, 0.0 }
 0x29a   : > { %2828 = vmatprep.mubr.msk.f32.mxu1 %vm1435_vm3, %v1643_v29  ;;  %2860 = vmatprep.mubr.msk.f32.mxu0 %vm1435_vm3, %v1643_v29 }
 0x29b   : > { %2829 = vmatmul.mubr.msk.f32.gmra.mxu1 %vm1435_vm3, %v1644_v27  ;;  %2861 = vmatmul.mubr.msk.f32.gmra.mxu0 %vm1435_vm3, %v1644_v27 }
 0x33f   : > { %v2809_v31 = vpop.f32.mrf.mxu1  ;;  %v3442_v35 = vpop.f32.mrf.mxu0 }
 0x340   : > { %v1776_v33 = vadd.f32 %v2809_v31, %v3439_v25 }
 0x341   : > { %v1770_v34 = vpop.f32.mrf.mxu1  ;;  %v3446_v40 = vpop.f32.mrf.mxu0 }
 0x342   : > { %2885 = vtanh.f32 %v1776_v33  ;;  %v1771_v36 = vadd.f32 %v3439_v25, %v1770_v34 }
 0x343   : > { %v2812_v37 = vpop.f32.mrf.mxu1  ;;  %v3450_v46 = vpop.f32.mrf.mxu0 }
 0x344   : > { %2887 = vtanh.f32 %v1771_v36  ;;  %v1786_v38 = vadd.f32 %v2812_v37, %v3439_v25 }
 0x345   : > { %v1780_v39 = vpop.f32.mrf.mxu1  ;;  %v3456_v53 = vpop.f32.mrf.mxu0 }
 0x346   : > { %2889 = vtanh.f32 %v1786_v38  ;;  %v1781_v41 = vadd.f32 %v3439_v25, %v1780_v39 }
 0x347   : > { %v2815_v42 = vpop.f32.mrf.mxu1  ;;  %v3461_v61 = vpop.f32.mrf.mxu0 }
 0x348   : > { %2891 = vtanh.f32 %v1781_v41  ;;  %v1796_v43 = vadd.f32 %v2815_v42, %v3439_v25 }
 0x349   : > { %v1790_v44 = vpop.f32.mrf.mxu1  ;;  %v3473_v19 = vpop.f32.mrf.mxu0 }
 0x34a   : > { %2893 = vtanh.f32 %v1796_v43  ;;  %v1791_v47 = vadd.f32 %v3439_v25, %v1790_v44 }
 0x34b   : > { %v2818_v48 = vpop.f32.mrf.mxu1  ;;  %v3483_v38 = vpop.f32.mrf.mxu0 }
 0x34c   : > { %2895 = vtanh.f32 %v1791_v47  ;;  %v1806_v50 = vadd.f32 %v2818_v48, %v3439_v25 }
 0x34d   : > { %v1800_v52 = vpop.f32.mrf.mxu1 }
 0x34e   : > { %2897 = vtanh.f32 %v1806_v50  ;;  %v1801_v54 = vadd.f32 %v3439_v25, %v1800_v52 }
 0x34f   : > { %v2886_v55 = vpop.eup %2885  ;;  %v2821_v56 = vpop.f32.mrf.mxu1 }
 0x350   : > { %2899 = vtanh.f32 %v1801_v54  ;;  %v1816_v57 = vadd.f32 %v2821_v56, %v3439_v25  ;;  %v1868_v58 = vmul.f32 %v2886_v55, %v3454_v51 }
 0x351   : > { %v2888_v59 = vpop.eup %2887  ;;  %v1810_v60 = vpop.f32.mrf.mxu1 }
 0x352   : > { %2901 = vtanh.f32 %v1816_v57  ;;  %v1811_v62 = vadd.f32 %v3439_v25, %v1810_v60  ;;  %v2203_v63 = vsel %vm991_vm2, %v1868_v58, 0.0  ;;  %v3466_v2 = vmul.f32 %v2888_v59, %v3454_v51  ;;  %v3492_v57 = vpop.f32.mrf.mxu0 }
 0x353   : > { %v2890_v0 = vpop.eup %2889  ;;  %2204 = vadd.xlane.f32.xlu0 %v2203_v63  ;;  %v2824_v1 = vpop.f32.mrf.mxu1 }
 0x354   : > { %v1870_v3 = vmul.f32 %v2890_v0, %v3454_v51  ;;  %2903 = vtanh.f32 %v1811_v62  ;;  %v1826_v4 = vadd.f32 %v2824_v1, %v3439_v25  ;;  %v2200_v7 = vsel %vm991_vm2, %v3466_v2, 0.0 }
 0x355   : > { %v2892_v5 = vpop.eup %2891  ;;  %v1820_v6 = vpop.f32.mrf.mxu1  ;;  %2201 = vadd.xlane.f32.xlu1 %v2200_v7 }
 0x356   : > { %v2045_v15 = vmul.f32 1.442695, %v1870_v3  ;;  %v1869_v17 = vmul.f32 %v2892_v5, %v3454_v51  ;;  %2905 = vtanh.f32 %v1826_v4  ;;  %v1821_v49 = vadd.f32 %v3439_v25, %v1820_v6  ;;  %v3498_v6 = vpop.f32.mrf.mxu0 }
 0x357   : > { %v2894_v21 = vpop.eup %2893  ;;  %v2827_v23 = vpop.f32.mrf.mxu1  ;;  %v2209_v36 = vsel %vm991_vm2, %v1870_v3, 0.0  ;;  %v2041_v3 = vmul.f32 1.442695, %v1868_v58 }
 0x358   : > { %2907 = vpow2.f32 %v2045_v15  ;;  %v1836_v27 = vadd.f32 %v2827_v23, %v3439_v25  ;;  %v3478_v31 = vmul.f32 %v2894_v21, %v3454_v51  ;;  %v2206_v34 = vsel %vm991_vm2, %v1869_v17, 0.0 }
 0x359   : > { %v2896_v29 = vpop.eup %2895  ;;  %2909 = vtanh.f32 %v1821_v49  ;;  %v1830_v33 = vpop.f32.mrf.mxu1  ;;  %2207 = vadd.xlane.f32.xlu0 %v2206_v34  ;;  %2210 = vadd.xlane.f32.xlu1 %v2209_v36  ;;  %v926_v15 = vadd.f32 %v3271_v10, %v3286_v14 }
 0x35a   : > { %v1871_v37 = vmul.f32 %v2896_v29, %v3454_v51  ;;  %v1831_v39 = vadd.f32 %v3439_v25, %v1830_v33  ;;  %2911 = vtanh.f32 %v1836_v27  ;;  %v2215_v54 = vsel %vm991_vm2, %v3478_v31, 0.0  ;;  %v2000_v36 = vpop.f32.mrf.mxu0 }
 0x35b   : > { %v2898_v41 = vpop.eup %2897  ;;  %v2830_v42 = vpop.f32.mrf.mxu1  ;;  %v2043_v27 = vmul.f32 1.442695, %v1869_v17  ;;  %v2049_v17 = vmul.f32 1.442695, %v3478_v31 }
 0x35c   : > { %v2047_v43 = vmul.f32 1.442695, %v1871_v37  ;;  %v1874_v44 = vmul.f32 %v2898_v41, %v3454_v51  ;;  %v1846_v47 = vadd.f32 %v2830_v42, %v3439_v25  ;;  %2913 = vtanh.f32 %v1831_v39 }
 0x35d   : > { %v2900_v48 = vpop.eup %2899  ;;  %v1840_v50 = vpop.f32.mrf.mxu1  ;;  %v2212_v52 = vsel %vm991_vm2, %v1871_v37, 0.0  ;;  %2216 = vadd.xlane.f32.xlu1 %v2215_v54  ;;  %v2039_v37 = vmul.f32 1.442695, %v3466_v2  ;;  %v931_v2 = vadd.f32 %v3286_v14, %v3280_v13  ;;  %v3527_v13 = vld [vmem:[%s3735_s15] ss:$0 sm:$0xff] }
 0x35e   : > { %2915 = vpow2.f32 %v2047_v43  ;;  %v2053_v55 = vmul.f32 1.442695, %v1874_v44  ;;  %v1873_v56 = vmul.f32 %v2900_v48, %v3454_v51  ;;  %v1841_v59 = vadd.f32 %v3439_v25, %v1840_v50  ;;  %2213 = vadd.xlane.f32.xlu0 %v2212_v52  ;;  %v2856_v43 = vpop.f32.mrf.mxu0 }
 0x35f   : > { %v2902_v60 = vpop.eup %2901  ;;  %2917 = vtanh.f32 %v1846_v47  ;;  %v2221_v4 = vsel %vm991_vm2, %v1874_v44, 0.0 }
 0x360   : > { %2919 = vpow2.f32 %v2053_v55  ;;  %v2051_v62 = vmul.f32 1.442695, %v1873_v56  ;;  %v1876_v63 = vmul.f32 %v2902_v60, %v3454_v51  ;;  %v2218_v0 = vsel %vm991_vm2, %v1873_v56, 0.0 }
 0x361   : > { %v2904_v1 = vpop.eup %2903  ;;  %2921 = vtanh.f32 %v1841_v59  ;;  %2222 = vadd.xlane.f32.xlu1 %v2221_v4  ;;  %v2010_v59 = vpop.f32.mrf.mxu0 }
 0x362   : > { %2923 = vpow2.f32 %v2051_v62  ;;  %v2057_v5 = vmul.f32 1.442695, %v1876_v63  ;;  %v1875_v25 = vmul.f32 %v2904_v1, %v3454_v51  ;;  %2219 = vadd.xlane.f32.xlu0 %v2218_v0  ;;  %v2227_v29 = vsel %vm991_vm2, %v1876_v63, 0.0 }
 0x363   : > { %v2906_v7 = vpop.eup %2905  ;;  %v1996_v1 = vadd.f32 %v3483_v38, %v3527_v13 }
 0x364   : > { %2925 = vpow2.f32 %v2057_v5  ;;  %v2055_v49 = vmul.f32 1.442695, %v1875_v25  ;;  %v2224_v21 = vsel %vm991_vm2, %v1875_v25, 0.0  ;;  %v1878_v58 = vmul.f32 %v2906_v7, %v3454_v51 }
 0x365   : > { %v2908_v23 = vpop.eup %2907  ;;  %2927 = vpow2.f32 %v2041_v3  ;;  %2228 = vadd.xlane.f32.xlu1 %v2227_v29 }
 0x366   : > { %v2910_v33 = vpop.eup %2909  ;;  %v3506_v34 = vmul.f32 %v2908_v23, %v926_v15  ;;  %2929 = vpow2.f32 %v2055_v49  ;;  %2225 = vadd.xlane.f32.xlu0 %v2224_v21  ;;  %v2061_v10 = vmul.f32 1.442695, %v1878_v58  ;;  %v2233_v41 = vsel %vm991_vm2, %v1878_v58, 0.0  ;;  %v2859_v21 = vpop.f32.mrf.mxu0 }
 0x367   : > { %v3510_v39 = vmul.f32 %v2910_v33, %v3454_v51  ;;  %v2912_v42 = vpop.eup %2911  ;;  %v1991_v15 = vadd.f32 %v3527_v13, %v3492_v57  ;;  %v916_v33 = vadd.f32 %v3263_v8, %v3286_v14  ;;  %v921_v8 = vadd.f32 %v3286_v14, %v3274_v11 }
 0x368   : > { %2931 = vpow2.f32 %v2061_v10  ;;  %v1880_v47 = vmul.f32 %v2912_v42, %v3454_v51  ;;  %v2016_v10 = vadd.f32 %v2856_v43, %v3527_v13  ;;  %v936_v11 = vadd.f32 %v3277_v12, %v3286_v14 }
 0x369   : > { %2933 = vpow2.f32 %v2043_v27  ;;  %v2059_v44 = vmul.f32 1.442695, %v3510_v39  ;;  %v2914_v48 = vpop.eup %2913  ;;  %2234 = vadd.xlane.f32.xlu1 %v2233_v41  ;;  %v2006_v27 = vadd.f32 %v3498_v6, %v3527_v13  ;;  %v2020_v41 = vpop.f32.mrf.mxu0 }
 0x36a   : > { %2935 = vpow2.f32 %v2039_v37  ;;  %v3519_v52 = vmul.f32 %v2914_v48, %v3454_v51  ;;  %v2065_v54 = vmul.f32 1.442695, %v1880_v47  ;;  %v2239_v31 = vsel %vm991_vm2, %v1880_v47, 0.0 }
 0x36b   : > { %v2916_v50 = vpop.eup %2915  ;;  %2937 = vpow2.f32 %v2059_v44  ;;  %v2011_v48 = vadd.f32 %v3527_v13, %v2010_v59 }
 0x36c   : > { %v2918_v55 = vpop.eup %2917  ;;  %2939 = vpow2.f32 %v2049_v17  ;;  %v3522_v56 = vmul.f32 %v2916_v50, %v931_v2  ;;  %v2063_v62 = vmul.f32 1.442695, %v3519_v52  ;;  %v2862_v50 = vpop.f32.mrf.mxu0 }
 0x36d   : > { %v2920_v60 = vpop.eup %2919  ;;  %v3531_v63 = vmul.f32 %v2918_v55, %v3454_v51  ;;  %2941 = vpow2.f32 %v2065_v54  ;;  %2240 = vadd.xlane.f32.xlu1 %v2239_v31  ;;  %v2026_v55 = vadd.f32 %v2859_v21, %v3527_v13  ;;  %v2036_v12 = vadd.f32 %v2862_v50, %v3527_v13 }
 0x36e   : > { %v2922_v0 = vpop.eup %2921  ;;  %v2078_v3 = vmul.f32 %v2920_v60, %v3290_v16  ;;  %2943 = vpow2.f32 %v2063_v62 }
 0x36f   : > { %v2924_v4 = vpop.eup %2923  ;;  %v2069_v5 = vmul.f32 1.442695, %v3531_v63  ;;  %v3538_v25 = vmul.f32 %v2922_v0, %v3454_v51 }
 0x370   : > { %v3540_v7 = vadd.f32 %v2078_v3, %v1996_v1  ;;  %v2077_v49 = vmul.f32 %v2924_v4, %v3293_v18  ;;  %v2001_v18 = vadd.f32 %v3527_v13, %v2000_v36  ;;  %v1966_v36 = vadd.f32 %v3442_v35, %v3527_v13  ;;  %v2030_v4 = vpop.f32.mrf.mxu0 }
 0x371   : > { %v2926_v58 = vpop.eup %2925  ;;  %2945 = vpow2.f32 %v2069_v5  ;;  %v2067_v16 = vmul.f32 1.442695, %v3538_v25  ;;  %v2021_v1 = vadd.f32 %v3527_v13, %v2020_v41 }
 0x372   : > { %v2928_v38 = vpop.eup %2927  ;;  %v3546_v23 = vadd.f32 %v2077_v49, %v1991_v15  ;;  %v2080_v51 = vmul.f32 %v2926_v58, %v3297_v20 }
 0x373   : > { %v2930_v29 = vpop.eup %2929  ;;  %2947 = vpow2.f32 %v2067_v16  ;;  %v2072_v6 = vmul.f32 %v2928_v38, %v916_v33  ;;  %v1986_v16 = vadd.f32 %v3461_v61, %v3527_v13 }
 0x374   : > { %v3553_v57 = vadd.f32 %v2080_v51, %v2006_v27  ;;  %v2079_v37 = vmul.f32 %v2930_v29, %v3300_v22  ;;  %v911_v22 = vadd.f32 %v3286_v14, %v3268_v9  ;;  %v1971_v9 = vadd.f32 %v3527_v13, %v3456_v53 }
 0x375   : > { %v2932_v42 = vpop.eup %2931  ;;  %v2088_v59 = vadd.f32 %v2072_v6, %v1966_v36  ;;  %v2031_v27 = vadd.f32 %v3527_v13, %v2030_v4 }
 0x376   : > { %v2934_v17 = vpop.eup %2933  ;;  %v3558_v44 = vadd.f32 %v2079_v37, %v2001_v18  ;;  %v2082_v20 = vmul.f32 %v2932_v42, %v3303_v24  ;;  %v1981_v37 = vadd.f32 %v3527_v13, %v3473_v19  ;;  %v2242_v19 = vsel %vm991_vm2, %v3538_v25, 0.0 }
 0x377   : > { %v2936_v47 = vpop.eup %2935  ;;  %v2073_v31 = vmul.f32 %v2934_v17, %v921_v8 }
 0x378   : > { %v2938_v2 = vpop.eup %2937  ;;  %v2098_v43 = vadd.f32 %v2082_v20, %v2016_v10  ;;  %v2071_v62 = vmul.f32 %v2936_v47, %v911_v22  ;;  %v2091_v10 = vadd.f32 %v3522_v56, %v1981_v37 }
 0x379   : > { %v2940_v54 = vpop.eup %2939  ;;  %v2081_v24 = vmul.f32 %v2938_v2, %v3306_v26  ;;  %v1961_v26 = vadd.f32 %v3527_v13, %v3446_v40  ;;  %v2089_v5 = vadd.f32 %v2073_v31, %v1971_v9 }
 0x37a   : > { %v2942_v60 = vpop.eup %2941  ;;  %v2076_v15 = vmul.f32 %v2940_v54, %v936_v11 }
 0x37b   : > { %v3574_v0 = vadd.f32 %v2081_v24, %v2011_v48  ;;  %v2084_v35 = vmul.f32 %v2942_v60, %v3309_v28  ;;  %v2944_v3 = vpop.eup %2943  ;;  %v981_v28 = vadd.f32 %v3286_v14, %v3332_v45  ;;  %v2087_v58 = vadd.f32 %v2071_v62, %v1961_v26 }
 0x37c   : > { %2137 = vrot.lane.b32.xlu0 %v2088_v59, %s2977_s27  ;;  %v2083_v53 = vmul.f32 %v2944_v3, %v3312_v30  ;;  %v2092_v30 = vadd.f32 %v2076_v15, %v1986_v16  ;;  %v2230_v14 = vsel %vm991_vm2, %v3510_v39, 0.0  ;;  %v1976_v45 = vadd.f32 %v3450_v46, %v3527_v13 }
 0x37d   : > { %v2100_v49 = vadd.f32 %v2084_v35, %v2026_v55  ;;  %v2236_v46 = vsel %vm991_vm2, %v3519_v52, 0.0 }
 0x37e   : > { %v2946_v21 = vpop.eup %2945  ;;  %v3587_v40 = vadd.f32 %v2083_v53, %v2021_v1  ;;  %2139 = vrot.lane.b32.xlu1 %v2089_v5, %s2977_s27  ;;  %v2090_v61 = vadd.f32 %v3506_v34, %v1976_v45  ;;  %v3619_v34 = vstv %s2532_s25 }
 0x37f   : > { %v2086_v38 = vmul.f32 %v2946_v21, %v3315_v32  ;;  %v2245_v32 = vsel %vm991_vm2, %v3531_v63, 0.0 }
 0x380   : > { %v2948_v51 = vpop.eup %2947  ;;  %2135 = vrot.lane.b32.xlu0 %v2087_v58, %s2977_s27 }
 0x381   : > { %v2102_v29 = vadd.f32 %v2086_v38, %v2036_v12  ;;  %v2085_v33 = vmul.f32 %v2948_v51, %v981_v28 }
 0x382   : > { %2145 = vrot.lane.b32.xlu1 %v2092_v30, %s2977_s27 }
 0x383   : > { %v3593_v18 = vadd.f32 %v2085_v33, %v2031_v27 }
 0x39f   : > { %2231 = vadd.xlane.f32.xlu0 %v2230_v14 }
 0x3a6   : > { %2246 = vadd.xlane.f32.xlu1 %v2245_v32 }
 0x3b5   : > { %2141 = vrot.lane.b32.xlu0 %v2090_v61, %s2977_s27 }
 0x3b7   : > { %2143 = vrot.lane.b32.xlu1 %v2091_v10, %s2977_s27 }
 0x3bb   : > { %2149 = vrot.lane.b32.xlu1 %v3540_v7, %s2977_s27 }
 0x3bf   : > { %2153 = vrot.lane.b32.xlu1 %v3553_v57, %s2977_s27 }
 0x3c3   : > { %2157 = vrot.lane.b32.xlu1 %v2098_v43, %s2977_s27 }
 0x3c7   : > { %2161 = vrot.lane.b32.xlu1 %v2100_v49, %s2977_s27 }
 0x3cb   : > { %2165 = vrot.lane.b32.xlu1 %v2102_v29, %s2977_s27 }
 0x3d4   : > { %2237 = vadd.xlane.f32.xlu0 %v2236_v46 }
 0x3d8   : > { %2243 = vadd.xlane.f32.xlu0 %v2242_v19 }
 0x3dc   : > { %v2205_v39 = vpop.xlane.xlu0 %2204 }
 0x3dd   : > { %v2251_v52 = vadd.f32 %v3619_v34, %v2205_v39 }
 0x3de   : > { %v2202_v56 = vpop.xlane.xlu1 %2201 }
 0x3df   : > { %2268 = vst.msk [vmem:[%s3625_s30 + $0x8] sm:$0xff] %vm2266_vm4, %v2251_v52  ;;  %v2250_v13 = vadd.f32 %v3619_v34, %v2202_v56 }
 0x3e1   : > { %2267 = vst.msk [vmem:[%s3625_s30] sm:$0xff] %vm2266_vm4, %v2250_v13 }
 0x3e2   : > { %v2208_v63 = vpop.xlane.xlu0 %2207  ;;  %v2211_v25 = vpop.xlane.xlu1 %2210 }
 0x3e3   : > { %v2252_v7 = vadd.f32 %v3619_v34, %v2208_v63  ;;  %v2253_v57 = vadd.f32 %v3619_v34, %v2211_v25 }
 0x3e5   : > { %2269 = vst.msk [vmem:[%s3625_s30 + $0x10] sm:$0xff] %vm2266_vm4, %v2252_v7  ;;  %2270 = vst.msk [vmem:[%s3625_s30 + $0x18] sm:$0xff] %vm2266_vm4, %v2253_v57 }
 0x3e6   : > { %v2217_v42 = vpop.xlane.xlu1 %2216 }
 0x3e7   : > { %v2214_v41 = vpop.xlane.xlu0 %2213  ;;  %v2255_v20 = vadd.f32 %v3619_v34, %v2217_v42 }
 0x3e8   : > { %v2254_v17 = vadd.f32 %v3619_v34, %v2214_v41 }
 0x3e9   : > { %2272 = vst.msk [vmem:[%s3625_s30 + $0x28] sm:$0xff] %vm2266_vm4, %v2255_v20 }
 0x3ea   : > { %2271 = vst.msk [vmem:[%s3625_s30 + $0x20] sm:$0xff] %vm2266_vm4, %v2254_v17  ;;  %v2223_v47 = vpop.xlane.xlu1 %2222 }
 0x3eb   : > { %v2220_v6 = vpop.xlane.xlu0 %2219  ;;  %v2257_v48 = vadd.f32 %v3619_v34, %v2223_v47 }
 0x3ec   : > { %v2256_v8 = vadd.f32 %v3619_v34, %v2220_v6 }
 0x3ed   : > { %2274 = vst.msk [vmem:[%s3625_s30 + $0x38] sm:$0xff] %vm2266_vm4, %v2257_v48 }
 0x3ee   : > { %2273 = vst.msk [vmem:[%s3625_s30 + $0x30] sm:$0xff] %vm2266_vm4, %v2256_v8  ;;  %2147 = vrot.lane.b32.xlu0 %v3546_v23, %s2977_s27  ;;  %v2229_v22 = vpop.xlane.xlu1 %2228 }
 0x3ef   : > { %v2226_v2 = vpop.xlane.xlu0 %2225  ;;  %v2259_v43 = vadd.f32 %v3619_v34, %v2229_v22 }
 0x3f0   : > { %v2258_v36 = vadd.f32 %v3619_v34, %v2226_v2 }
 0x3f1   : > { %2276 = vst.msk [vmem:[%s3625_s30 + $0x48] sm:$0xff] %vm2266_vm4, %v2259_v43 }
 0x3f2   : > { %2275 = vst.msk [vmem:[%s3625_s30 + $0x40] sm:$0xff] %vm2266_vm4, %v2258_v36  ;;  %2151 = vrot.lane.b32.xlu0 %v3558_v44, %s2977_s27  ;;  %v2235_v23 = vpop.xlane.xlu1 %2234 }
 0x3f3   : > { %v2138_v50 = vpop.permute.xlu0 %2137  ;;  %v2261_v54 = vadd.f32 %v3619_v34, %v2235_v23 }
 0x3f4   : > { %2185 = vst.msk [vmem:[%s3223_s1 + $0x8] sm:$0xff] %vm2183_vm5, %v2138_v50 }
 0x3f5   : > { %2278 = vst.msk [vmem:[%s3625_s30 + $0x58] sm:$0xff] %vm2266_vm4, %v2261_v54 }
 0x3f6   : > { %2155 = vrot.lane.b32.xlu0 %v3574_v0, %s2977_s27  ;;  %v2241_v31 = vpop.xlane.xlu1 %2240 }
 0x3f7   : > { %v2136_v24 = vpop.permute.xlu0 %2135  ;;  %v2263_v55 = vadd.f32 %v3619_v34, %v2241_v31 }
 0x3f8   : > { %2184 = vst.msk [vmem:[%s3223_s1] sm:$0xff] %vm2183_vm5, %v2136_v24 }
 0x3f9   : > { %2280 = vst.msk [vmem:[%s3625_s30 + $0x68] sm:$0xff] %vm2266_vm4, %v2263_v55 }
 0x3fa   : > { %2159 = vrot.lane.b32.xlu0 %v3587_v40, %s2977_s27  ;;  %v2140_v44 = vpop.permute.xlu1 %2139 }
 0x3fb   : > { %2186 = vst.msk [vmem:[%s3223_s1 + $0x10] sm:$0xff] %vm2183_vm5, %v2140_v44 }
 0x3fe   : > { %2163 = vrot.lane.b32.xlu0 %v3593_v18, %s2977_s27  ;;  %v2146_v60 = vpop.permute.xlu1 %2145 }
 0x3ff   : > { %2189 = vst.msk [vmem:[%s3223_s1 + $0x28] sm:$0xff] %vm2183_vm5, %v2146_v60 }
 0x428   : > { %v2232_v11 = vpop.xlane.xlu0 %2231 }
 0x429   : > { %v2260_v59 = vadd.f32 %v3619_v34, %v2232_v11 }
 0x42b   : > { %2277 = vst.msk [vmem:[%s3625_s30 + $0x50] sm:$0xff] %vm2266_vm4, %v2260_v59 }
 0x42c   : > { %v2142_v62 = vpop.permute.xlu0 %2141 }
 0x42d   : > { %2187 = vst.msk [vmem:[%s3223_s1 + $0x18] sm:$0xff] %vm2183_vm5, %v2142_v62 }
 0x42f   : > { %v2247_v9 = vpop.xlane.xlu1 %2246 }
 0x430   : > { %v2265_v0 = vadd.f32 %v3619_v34, %v2247_v9 }
 0x432   : > { %2282 = vst.msk [vmem:[%s3625_s30 + $0x78] sm:$0xff] %vm2266_vm4, %v2265_v0 }
 0x433   : > { %v2144_v35 = vpop.permute.xlu1 %2143 }
 0x434   : > { %2188 = vst.msk [vmem:[%s3223_s1 + $0x20] sm:$0xff] %vm2183_vm5, %v2144_v35 }
 0x437   : > { %v2150_v1 = vpop.permute.xlu1 %2149 }
 0x438   : > { %2191 = vst.msk [vmem:[%s3223_s1 + $0x38] sm:$0xff] %vm2183_vm5, %v2150_v1 }
 0x43b   : > { %v2154_v3 = vpop.permute.xlu1 %2153 }
 0x43c   : > { %2193 = vst.msk [vmem:[%s3223_s1 + $0x48] sm:$0xff] %vm2183_vm5, %v2154_v3 }
 0x43f   : > { %v2158_v26 = vpop.permute.xlu1 %2157 }
 0x440   : > { %2195 = vst.msk [vmem:[%s3223_s1 + $0x58] sm:$0xff] %vm2183_vm5, %v2158_v26 }
 0x443   : > { %v2162_v12 = vpop.permute.xlu1 %2161 }
 0x444   : > { %2197 = vst.msk [vmem:[%s3223_s1 + $0x68] sm:$0xff] %vm2183_vm5, %v2162_v12 }
 0x447   : > { %v2166_v4 = vpop.permute.xlu1 %2165 }
 0x448   : > { %2199 = vst.msk [vmem:[%s3223_s1 + $0x78] sm:$0xff] %vm2183_vm5, %v2166_v4 }
 0x45d   : > { %v2238_v5 = vpop.xlane.xlu0 %2237 }
 0x45e   : > { %v2262_v15 = vadd.f32 %v3619_v34, %v2238_v5 }
 0x460   : > { %2279 = vst.msk [vmem:[%s3625_s30 + $0x60] sm:$0xff] %vm2266_vm4, %v2262_v15 }
 0x461   : > { %v2244_v49 = vpop.xlane.xlu0 %2243 }
 0x462   : > { %v2264_v53 = vadd.f32 %v3619_v34, %v2244_v49 }
 0x464   : > { %2281 = vst.msk [vmem:[%s3625_s30 + $0x70] sm:$0xff] %vm2266_vm4, %v2264_v53 }
 0x465   : > { %v2148_v21 = vpop.permute.xlu0 %2147 }
 0x466   : > { %2190 = vst.msk [vmem:[%s3223_s1 + $0x30] sm:$0xff] %vm2183_vm5, %v2148_v21 }
 0x469   : > { %v2152_v28 = vpop.permute.xlu0 %2151 }
 0x46a   : > { %2192 = vst.msk [vmem:[%s3223_s1 + $0x40] sm:$0xff] %vm2183_vm5, %v2152_v28 }
 0x46d   : > { %v2156_v58 = vpop.permute.xlu0 %2155 }
 0x46e   : > { %2194 = vst.msk [vmem:[%s3223_s1 + $0x50] sm:$0xff] %vm2183_vm5, %v2156_v58 }
 0x471   : > { %v2160_v16 = vpop.permute.xlu0 %2159 }
 0x472   : > { %2196 = vst.msk [vmem:[%s3223_s1 + $0x60] sm:$0xff] %vm2183_vm5, %v2160_v16 }
 0x475   : > { %v2164_v40 = vpop.permute.xlu0 %2163 }
 0x476   : > { %2198 = vst.msk [vmem:[%s3223_s1 + $0x70] sm:$0xff] %vm2183_vm5, %v2164_v40 }
 0x477 PF: > { %s29_s24 = sadd.s32 1, %s2974_s24  }
 0x478   : > { %p26_p1 = scmp.ge.s32.totalorder %s29_s24, 4  }
 0x47a   :  { %28 = sbr.rel (!%p26_p1) target bundleno = 4 (0x4), region = 134 }
 0x47f   :  { %2322 = vsyncpa [#allocation3], 1 }
 0x480   :  { %2324 = vsyncpa [#allocation3 + $0x1], 1 }

</bundles_post_ra>
